<compile_context>
chip_gen: v6e
topology: v6e:2x2x1
jax: 0.10.0
libtpu: 0.0.40
codegen_flags: <defaults>
</compile_context>

<pallas_src>
import functools
from typing import NamedTuple, Optional, Any

import numpy as np
import jax
import jax.numpy as jnp
from jax.experimental import pallas as pl
from jax.experimental.pallas import tpu as pltpu


# -----------------------------------------------------------------------------
# Pallas kernel 1 (setup, once per image): thresholded Gram T (uint8) + d0
# -----------------------------------------------------------------------------
def _setup_kernel(x_ref, t_ref, d0_ref, *, tau, eps, p_valid):
    # x_ref: (1, Pp, D) padded patch features; view dropped to 2-D via [0]
    x = x_ref[0]                                            # (Pp, D) f32
    sq = jnp.sum(x * x, axis=-1, keepdims=True)             # per-patch ||x||^2
    # F.normalize(p=2, eps=1e-12) semantics via rsqrt (EUP slot); padded rows
    # (all-zero) normalize to exactly 0.
    xn = x * jax.lax.rsqrt(jnp.maximum(sq, 1e-24))
    # Gram on the MXU, f32 inputs + f32 accumulation (one-shot setup, so we
    # keep full precision of the cosines per the correctness review).
    g = jnp.dot(xn, xn.T, preferred_element_type=jnp.float32)   # (Pp, Pp)
    t = g > tau                                             # requires tau >= 0
    t_ref[0] = t.astype(jnp.uint8)
    # Iteration-0 affinity is exactly T (padded Gram rows/cols are 0 -> eps),
    # so fuse its degree here: d0_j = sum_{i<P} (T_ij ? 1 : eps), column sums
    # == row sums by symmetry.  Rows i >= P are excluded via an iota mask.
    row_valid = jax.lax.broadcasted_iota(jnp.int32, g.shape, 0) < p_valid
    a0 = jnp.where(t, 1.0, eps)
    d0_ref[0] = jnp.sum(jnp.where(row_valid, a0, 0.0), axis=0, keepdims=True)


@functools.partial(jax.jit, static_argnames=("tau", "eps", "p_valid"))
def _setup_call(x_pad, *, tau, eps, p_valid):
    B, Pp, D = x_pad.shape
    kernel = functools.partial(_setup_kernel, tau=tau, eps=eps, p_valid=p_valid)
    return pl.pallas_call(
        kernel,
        out_shape=(
            jax.ShapeDtypeStruct((B, Pp, Pp), jnp.uint8),     # T = (G > tau)
            jax.ShapeDtypeStruct((B, 1, Pp), jnp.float32),    # d0 (lane-dense)
        ),
        grid=(B,),
        in_specs=[pl.BlockSpec((1, Pp, D), lambda b: (b, 0, 0))],
        out_specs=(
            pl.BlockSpec((1, Pp, Pp), lambda b: (b, 0, 0)),
            pl.BlockSpec((1, 1, Pp), lambda b: (b, 0, 0)),
        ),
        compiler_params=pltpu.CompilerParams(dimension_semantics=("parallel",)),
    )(x_pad)


# -----------------------------------------------------------------------------
# Pallas kernel 2 (per iteration, VPU only): masked uint8 affinity + degree
# -----------------------------------------------------------------------------
def _masked_affinity_kernel(t_ref, krow_ref, kcol_ref, a_ref, d_ref,
                            *, eps, p_valid, row_block):
    # t_ref: (1, rb, Pp) uint8 thresholded Gram strip; krow: (1, rb, 1) f32;
    # kcol: (1, 1, Pp) f32.  keep in {0,1}; keep_i*keep_j*T_ij is exactly the
    # thresholded Gram of the masked features for tau >= 0.
    t = t_ref[0].astype(jnp.float32)                        # (rb, Pp)
    a = t * krow_ref[0] * kcol_ref[0]                       # {0,1} f32
    a_ref[0] = a.astype(jnp.uint8)                          # uint8 affinity
    # Degree (column sums == row sums by symmetry) of the {1, eps} matrix,
    # restricted to valid rows i < P via an iota mask offset by the row strip.
    row0 = pl.program_id(1) * row_block
    rows = row0 + jax.lax.broadcasted_iota(jnp.int32, a.shape, 0)
    a_eps = jnp.where(rows < p_valid, a * (1.0 - eps) + eps, 0.0)
    d_ref[0] = jnp.sum(a_eps, axis=0, keepdims=True)        # (1, Pp) lane-dense


@functools.partial(jax.jit, static_argnames=("eps", "p_valid", "row_block"))
def _masked_affinity_call(t, keep_row, keep_col, *, eps, p_valid, row_block):
    B, Pp, _ = t.shape
    n_strips = Pp // row_block
    kernel = functools.partial(
        _masked_affinity_kernel, eps=eps, p_valid=p_valid, row_block=row_block)
    return pl.pallas_call(
        kernel,
        out_shape=(
            jax.ShapeDtypeStruct((B, Pp, Pp), jnp.uint8),           # A {0,1}
            jax.ShapeDtypeStruct((B * n_strips, 1, Pp), jnp.float32),  # d partials
        ),
        grid=(B, n_strips),
        in_specs=[
            pl.BlockSpec((1, row_block, Pp), lambda b, r: (b, r, 0)),  # T
            pl.BlockSpec((1, row_block, 1), lambda b, r: (b, r, 0)),   # keep_row
            pl.BlockSpec((1, 1, Pp), lambda b, r: (b, 0, 0)),          # keep_col
        ],
        out_specs=(
            pl.BlockSpec((1, row_block, Pp), lambda b, r: (b, r, 0)),
            pl.BlockSpec((1, 1, Pp), lambda b, r: (b * n_strips + r, 0, 0)),
        ),
        compiler_params=pltpu.CompilerParams(
            dimension_semantics=("parallel", "parallel")),
    )(t, keep_row, keep_col)


# -----------------------------------------------------------------------------
# Host-side helpers (no clean Pallas equivalent — serial / data-dependent)
# -----------------------------------------------------------------------------
def _second_smallest_eigenvector(A, d_i):
    # TODO(synk): scipy.linalg.eigh generalized eigenproblem has no Pallas
    # equivalent; solved on host via symmetric transform + numpy.linalg.eigh.
    d_inv_sqrt = 1.0 / np.sqrt(d_i)
    D = np.diag(d_i)
    M = (D - A) * d_inv_sqrt[:, None] * d_inv_sqrt[None, :]
    M = (M + M.T) / 2.0
    _, V = np.linalg.eigh(M)
    v = d_inv_sqrt * V[:, 1]        # 2nd-smallest; normalized so v^T D v = 1
    eigenvec = np.copy(v)
    second_smallest_vec = v
    return eigenvec, second_smallest_vec


def _label_components(binary):
    # TODO(synk): scipy.ndimage.label (4-connectivity) has no Pallas equivalent;
    # implemented as a host flood fill.
    binary = np.asarray(binary) != 0
    H, W = binary.shape
    labels = np.zeros((H, W), dtype=np.int32)
    cur = 0
    for i in range(H):
        for j in range(W):
            if binary[i, j] and labels[i, j] == 0:
                cur += 1
                stack = [(i, j)]
                labels[i, j] = cur
                while stack:
                    y, x = stack.pop()
                    for dy, dx in ((1, 0), (-1, 0), (0, 1), (0, -1)):
                        ny, nx = y + dy, x + dx
                        if (
                            0 <= ny < H
                            and 0 <= nx < W
                            and binary[ny, nx]
                            and labels[ny, nx] == 0
                        ):
                            labels[ny, nx] = cur
                            stack.append((ny, nx))
    return labels, cur


def _nearest_resize(img, out_size):
    # F.interpolate(mode='nearest') semantics: src = floor(dst * in / out)
    H, W = out_size
    h, w = img.shape
    ri = (np.arange(H) * h) // H
    ci = (np.arange(W) * w) // W
    return img[ri][:, ci]


def _iou(mask1, mask2):
    m1 = np.asarray(mask1) > 0.5
    m2 = np.asarray(mask2) > 0.5
    intersection = np.sum(m1 & (m1 == m2))
    union = np.sum(m1 | m2)
    with np.errstate(divide="ignore", invalid="ignore"):
        val = np.float64(intersection) / np.float64(union)
    return float(val)


def _check_num_fg_corners(bipartition, dims):
    b = np.asarray(bipartition).reshape(dims)
    return int(b[0][0]) + int(b[0][-1]) + int(b[-1][0]) + int(b[-1][-1])


def _detect_box(bipartition, seed, dims, initial_im_size=None, scales=None):
    objects, _ = _label_components(bipartition)
    cc = objects[np.unravel_index(seed, dims)]
    mask = np.where(objects == cc)
    ymin, ymax = (min(mask[0]), max(mask[0]) + 1)
    xmin, xmax = (min(mask[1]), max(mask[1]) + 1)
    r_xmin, r_xmax = (scales[1] * xmin, scales[1] * xmax)
    r_ymin, r_ymax = (scales[0] * ymin, scales[0] * ymax)
    pred = [r_xmin, r_ymin, r_xmax, r_ymax]
    if initial_im_size:
        pred[2] = min(pred[2], initial_im_size[1])
        pred[3] = min(pred[3], initial_im_size[0])
    pred_feats = [ymin, xmin, ymax, xmax]
    return pred, pred_feats, objects, mask


# -----------------------------------------------------------------------------
# Batched MaskCut forward (mirrors the PyTorch reference; one pallas_call per
# generation step for the whole batch, iteration 0 fused into setup)
# -----------------------------------------------------------------------------
def maskcut_forward_batched(feats_b, dims, scales, init_image_size, tau=0, N=7):
    """feats_b: (B, num_patches, dim) array."""
    # Precomputed-threshold fast path requires tau >= 0 (masked-out Gram
    # entries are exactly 0 and must NOT pass the threshold).
    assert tau >= 0, "maskcut_forward_batched requires tau >= 0"
    feats_np = np.asarray(feats_b, dtype=np.float32)
    B, P, D = feats_np.shape
    assert int(np.prod(dims)) == P, (dims, P)
    Pp = max(128, ((P + 127) // 128) * 128)          # lane-dense affinity output
    eps = 1e-5

    # On v7x (2 TensorCores) a batch of 1 (or odd B) would leave a core idle
    # with grid=(B,); split rows into 128-row strips in that case.
    if (B % 2 == 1) and (Pp % 128 == 0) and (Pp // 128 >= 2):
        row_block = 128
    else:
        row_block = Pp

    # One-time setup: pad patches (channels left unpadded; block last-dim ==
    # full array dim is legal), compute uint8 T = (G > tau) and the
    # iteration-0 degree for every image.  T stays resident on device.
    x_pad_np = np.zeros((B, Pp, D), dtype=np.float32)
    x_pad_np[:, :P, :] = feats_np
    T_dev, d0_dev = _setup_call(
        jnp.asarray(x_pad_np), tau=float(tau), eps=float(eps), p_valid=P)

    paintings = [np.zeros(dims, dtype=np.float64) for _ in range(B)]
    current_masks = [None] * B
    bipartitions = [[] for _ in range(B)]
    eigvecs = [[] for _ in range(B)]
    seeds = [0] * B

    for i in range(N):
        if i == 0:
            # Iteration 0 fused into setup: A0 == T, d0 from the setup kernel.
            A_np = np.asarray(T_dev)                 # uint8 (B, Pp, Pp)
            d_np = np.asarray(d0_dev)[:, 0, :]       # (B, Pp) f32
        else:
            for b in range(B):
                # get_masked_affinity_matrix: accumulate & binarize painting
                paintings[b] = paintings[b] + np.asarray(current_masks[b])
                paintings[b] = (paintings[b] > 0).astype(np.float64)

            # Build keep masks on host with their final kernel shapes/dtype.
            keep_row = np.zeros((B, Pp, 1), dtype=np.float32)
            for b in range(B):
                keep_row[b, :P, 0] = (1.0 - paintings[b]).reshape(-1)
            keep_col = np.ascontiguousarray(np.transpose(keep_row, (0, 2, 1)))

            # --- Pallas hot path: uint8 affinity + fused degree, whole batch ---
            A_dev, d_dev = _masked_affinity_call(
                T_dev, keep_row, keep_col,
                eps=float(eps), p_valid=P, row_block=row_block)
            A_np = np.asarray(A_dev)                 # uint8 (B, Pp, Pp)
            d_np = np.asarray(d_dev).reshape(B, -1, Pp).sum(axis=1)   # (B, Pp)

        for b in range(B):
            # Affine map {0,1} -> {eps, 1} applied on host (f64), as in ref.
            A = A_np[b, :P, :P].astype(np.float64) * (1.0 - eps) + eps
            d_i = d_np[b, :P].astype(np.float64)     # kernel-fused degree

            eigenvec, second_smallest_vec = _second_smallest_eigenvector(A, d_i)
            avg = np.sum(second_smallest_vec) / len(second_smallest_vec)
            bipartition = second_smallest_vec > avg
            seed = int(np.argmax(np.abs(second_smallest_vec)))

            nc = _check_num_fg_corners(bipartition, dims)
            reverse = True if nc >= 3 else (bipartition[seed] != 1)
            if reverse:
                eigenvec = eigenvec * -1
                bipartition = np.logical_not(bipartition)
                seed = int(np.argmax(eigenvec))
            else:
                seed = int(np.argmax(second_smallest_vec))

            bipartition_2d = bipartition.reshape(dims).astype(float)
            _, _, _, cc = _detect_box(
                bipartition_2d, seed, dims,
                scales=scales, initial_im_size=init_image_size
            )
            pseudo_mask = np.zeros(dims)
            pseudo_mask[cc[0], cc[1]] = 1

            if i >= 1:
                ratio = pseudo_mask.sum() / pseudo_mask.shape[0] / pseudo_mask.shape[1]
                if _iou(current_masks[b], pseudo_mask) > 0.5 or ratio <= 0.01:
                    pseudo_mask = np.zeros(dims)
            current_masks[b] = pseudo_mask

            masked_out = 0 if len(bipartitions[b]) == 0 else np.sum(bipartitions[b], axis=0)
            bip_img = _nearest_resize(pseudo_mask, init_image_size)
            bipartition_masked = bip_img - masked_out
            bipartition_masked[bipartition_masked <= 0] = 0
            bipartitions[b].append(bipartition_masked)

            eigvec = second_smallest_vec.reshape(dims)
            eigvec = _nearest_resize(eigvec, init_image_size)
            eigvecs[b].append(eigvec)
            seeds[b] = seed

    return seeds, bipartitions, eigvecs


def maskcut(feat, tau, N=7):
    # Single-image convenience wrapper (feat: (num_patches, dim)); math-equivalent
    # to the torch permute(1,0) + column-normalized Gram.  Uses the row-strip
    # split so both v7x TensorCores are engaged even at B=1.
    _, bips, eigs = maskcut_forward_batched(
        np.asarray(feat)[None], [14, 14], [16, 16], [320, 320], tau, N=N
    )
    return bips[0], eigs[0]


class PatchReconstructionOutput(NamedTuple):
    reconstruction: Optional[Any]
    masks: Any
    masks_as_image: Optional[Any]
    target: Optional[Any]


class MaskCut:
    def __init__(self, tau=0.15, N=6, cpu=False):
        self.tau = tau
        self.N = N
        self.cpu = cpu

    def create_padding_mask(self, bips):
        sum_masks = bips.sum(axis=1)
        return (sum_masks == 0).astype(bips.dtype)

    def __call__(self, feature):
        # Batched end-to-end: the setup kernel and every per-iteration affinity
        # kernel run once for the whole batch.
        _, bip_lists, eig_lists = maskcut_forward_batched(
            np.asarray(feature), [14, 14], [16, 16], [320, 320], self.tau, N=self.N
        )
        bips_np = np.stack([np.stack(b) for b in bip_lists])   # (B, N, 320, 320)
        bips = jnp.asarray(bips_np, dtype=jnp.float32)
        padding = self.create_padding_mask(bips)
        bips = jnp.concatenate([padding[:, None], bips], axis=1)
        return PatchReconstructionOutput(
            reconstruction=None, masks=bips, masks_as_image=None, target=None
        )


if __name__ == "__main__":
    key = jax.random.PRNGKey(0)
    B, P, D = 2, 196, 32  # 196 = 14*14 patches (hard-coded dims), small channel dim
    feature = jax.random.normal(key, (B, P, D), dtype=jnp.float32)

    # Batched path (B=2): grid=(B,) with full (Pp, Pp) blocks.
    model = MaskCut(tau=0.15, N=6)
    out = model(feature)
    masks = jax.block_until_ready(out.masks)
    assert masks.shape == (B, model.N + 1, 320, 320), masks.shape

    # Single-image path (B=1): exercises the v7x two-core row-strip split.
    bips1, eigs1 = maskcut(np.asarray(feature)[0], tau=0.15, N=2)
    assert len(bips1) == 2 and bips1[0].shape == (320, 320)

    print("KERNEL_OK")
</pallas_src>

<mosaic_0001>
module attributes {stable_mosaic.version = 11 : i64} {
  func.func @_setup_kernel(%arg0: i32, %arg1: memref<1x256x32xf32, #tpu.memory_space<vmem>>, %arg2: memref<1x256x256xi8, #tpu.memory_space<vmem>>, %arg3: memref<1x1x256xf32, #tpu.memory_space<vmem>>) attributes {dimension_semantics = [#tpu.dimension_semantics<parallel>], iteration_bounds = array<i64: 2>, scalar_prefetch = 0 : i64, scratch_operands = 0 : i64, tpu.core_type = #tpu.core_type<tc>, window_params = [{transform_indices = @transform_0, window_bounds = array<i64: 1, 256, 32>}, {transform_indices = @transform_1, window_bounds = array<i64: 1, 256, 256>}, {transform_indices = @transform_2, window_bounds = array<i64: 1, 1, 256>}]} {
    %c0 = arith.constant 0 : index
    %c0_0 = arith.constant 0 : index
    %c0_1 = arith.constant 0 : index
    %0 = vector.load %arg1[%c0, %c0_0, %c0_1] : memref<1x256x32xf32, #tpu.memory_space<vmem>>, vector<1x256x32xf32>
    %1 = vector.shape_cast %0 : vector<1x256x32xf32> to vector<256x32xf32>
    %2 = arith.mulf %1, %1 : vector<256x32xf32>
    %cst = arith.constant dense<0.000000e+00> : vector<256xf32>
    %3 = vector.multi_reduction <add>, %2, %cst [1] : vector<256x32xf32> to vector<256xf32>
    %4 = vector.shape_cast %3 : vector<256xf32> to vector<256x1xf32>
    %cst_2 = arith.constant 1.000000e-24 : f32
    %5 = vector.broadcast %cst_2 : f32 to vector<256x1xf32>
    %6 = arith.maximumf %4, %5 : vector<256x1xf32>
    %7 = math.rsqrt %6 : vector<256x1xf32>
    %8 = vector.broadcast %7 : vector<256x1xf32> to vector<256x32xf32>
    %9 = arith.mulf %1, %8 : vector<256x32xf32>
    %10 = tpu.transpose %9, [1, 0] : vector<256x32xf32> -> vector<32x256xf32>
    %cst_3 = arith.constant dense<0.000000e+00> : vector<256x256xf32>
    %11 = tpu.matmul %9, %10, %cst_3 {dimension_numbers = #tpu.dot_dimension_numbers<[1], [0], [0], [1], [0, 0, 1, 1], [], []>} : vector<256x32xf32>, vector<32x256xf32>, vector<256x256xf32> -> vector<256x256xf32>
    %cst_4 = arith.constant 1.500000e-01 : f32
    %12 = vector.broadcast %cst_4 : f32 to vector<256x256xf32>
    %13 = arith.cmpf ogt, %11, %12 : vector<256x256xf32>
    %14 = arith.extui %13 : vector<256x256xi1> to vector<256x256xi8>
    %c0_5 = arith.constant 0 : index
    %c0_6 = arith.constant 0 : index
    %c0_7 = arith.constant 0 : index
    %15 = vector.load %arg2[%c0_5, %c0_6, %c0_7] : memref<1x256x256xi8, #tpu.memory_space<vmem>>, vector<1x256x256xi8>
    %16 = vector.shape_cast %15 : vector<1x256x256xi8> to vector<256x256xi8>
    %17 = vector.shape_cast %14 : vector<256x256xi8> to vector<1x256x256xi8>
    tpu.vector_store %arg2[%c0_5, %c0_6, %c0_7], %17 {strides = array<i32>} : memref<1x256x256xi8, #tpu.memory_space<vmem>>, vector<1x256x256xi8>,
    %18 = tpu.iota {dimensions = array<i32: 0>} : vector<256x256xi32>
    %c196_i32 = arith.constant 196 : i32
    %19 = vector.broadcast %c196_i32 : i32 to vector<256x256xi32>
    %20 = arith.cmpi slt, %18, %19 : vector<256x256xi32>
    %cst_8 = arith.constant 1.000000e+00 : f32
    %cst_9 = arith.constant 9.99999974E-6 : f32
    %21 = vector.broadcast %cst_8 : f32 to vector<256x256xf32>
    %22 = vector.broadcast %cst_9 : f32 to vector<256x256xf32>
    %23 = arith.select %13, %21, %22 : vector<256x256xi1>, vector<256x256xf32>
    %cst_10 = arith.constant 0.000000e+00 : f32
    %24 = vector.broadcast %cst_10 : f32 to vector<256x256xf32>
    %25 = arith.select %20, %23, %24 : vector<256x256xi1>, vector<256x256xf32>
    %cst_11 = arith.constant dense<0.000000e+00> : vector<256xf32>
    %26 = vector.multi_reduction <add>, %25, %cst_11 [0] : vector<256x256xf32> to vector<256xf32>
    %27 = vector.shape_cast %26 : vector<256xf32> to vector<1x256xf32>
    %c0_12 = arith.constant 0 : index
    %c0_13 = arith.constant 0 : index
    %c0_14 = arith.constant 0 : index
    %28 = vector.load %arg3[%c0_12, %c0_13, %c0_14] : memref<1x1x256xf32, #tpu.memory_space<vmem>>, vector<1x1x256xf32>
    %29 = vector.shape_cast %28 : vector<1x1x256xf32> to vector<1x256xf32>
    %30 = vector.shape_cast %27 : vector<1x256xf32> to vector<1x1x256xf32>
    tpu.vector_store %arg3[%c0_12, %c0_13, %c0_14], %30 {strides = array<i32>} : memref<1x1x256xf32, #tpu.memory_space<vmem>>, vector<1x1x256xf32>,
    return
  }
  func.func @transform_0(%arg0: i32) -> (i32, i32, i32) {
    %c0_i32 = arith.constant 0 : i32
    %c0_i32_0 = arith.constant 0 : i32
    %c0_i32_1 = arith.constant 0 : i32
    return %arg0, %c0_i32, %c0_i32_0 : i32, i32, i32
  }
  func.func @transform_1(%arg0: i32) -> (i32, i32, i32) {
    %c0_i32 = arith.constant 0 : i32
    %c0_i32_0 = arith.constant 0 : i32
    %c0_i32_1 = arith.constant 0 : i32
    return %arg0, %c0_i32, %c0_i32_0 : i32, i32, i32
  }
  func.func @transform_2(%arg0: i32) -> (i32, i32, i32) {
    %c0_i32 = arith.constant 0 : i32
    %c0_i32_0 = arith.constant 0 : i32
    %c0_i32_1 = arith.constant 0 : i32
    return %arg0, %c0_i32, %c0_i32_0 : i32, i32, i32
  }
}

</mosaic_0001>

<bundles_post_ra>
// kernel: _setup_call.1
= control target key start
LH: loop header
LB: loop body
LE: loop exit
PB: predicated region body
PF: predicated region fallthrough
CT: control target
= control target key end

     0   :  { %8 = vsyncpa [#allocation3], 0  ;;  %s2842_s0 = inlined_call_operand.vmem [shape: f32[2,256,32], index: 0, kind: input, shape index: {}]   ;;  %s2843_s1 = inlined_call_operand.hbm [shape: u8[2,256,256], index: 1, kind: output, shape index: {0}]   ;;  %s2844_s2 = inlined_call_operand.hbm [shape: f32[2,1,256], index: 2, kind: output, shape index: {1}]  }
   0x1   :  { %10 = vsyncpa [#allocation3 + $0x1], 0 }
   0x2   :  { %11 = vsyncpa [#allocation5], 0 }
   0x3   :  { %13 = vsyncpa [#allocation5 + $0x1], 0  ;;  %s1764_s9 = smov 0   ;;  %s1766_s10 = smov 0  }
   0x4   :  { %s1768_s11 = smov 0   ;;  %s1770_s12 = smov 0  }
   0x5 LB: > { %s1785_s13 = sadd.s32 4294967295, %s1740_s12   ;;  %s1326_s14 = sadd.s32 4294967294, %s1740_s12   ;;  %s1740_s12 = sphi %s1770_s12, %s2934_s12   ;;  %s1736_s11 = sphi %s1768_s11, %s2933_s11   ;;  %s1732_s10 = sphi %s1766_s10, %s2932_s10   ;;  %s1728_s9 = sphi %s1764_s9, %s2931_s9  }
   0x6   : > { %s1789_s15 = sadd.s32 1, %s1740_s12   ;;  %s52_s16 = sadd.s32 1, %s1736_s11 }
   0x7   : > { %s49_s17 = ssub.s32 %s1740_s12, %s1789_s15  ;;  %p62_p0 = scmp.ne.s32.totalorder %s1736_s11, %s1732_s10 }
   0x8   : > { %p50_p1 = scmp.eq.s32.totalorder %s49_s17, 0  ;;  %p63_p2 = scmp.eq.s32.totalorder %s1785_s13, 1 }
   0x9   : > { %p68_p3 = scmp.ne.s32.totalorder %s1732_s10, %s1728_s9  ;;  %p69_p4 = scmp.eq.s32.totalorder %s1326_s14, 1 }
   0xa   : > { %s1800_s18 = scalar_select %p50_p1, %s1736_s11, %s52_s16  }
   0xb   : > { %p1802_p5 = por %p63_p2, %p62_p0  ;;  %p1806_p6 = por %p69_p4, %p68_p3 }
   0xc   : > { %p1329_p7 = scmp.ge.s32.totalorder %s1740_s12, 1  ;;  %p121_p8 = scmp.lt.s32.totalorder %s1740_s12, 3 }
   0xe   : > { %p122_p9 = pnand %p1329_p7, %p121_p8 }
   0xf   : > { %p148_p10 = scmp.lt.s32.totalorder (!%p122_p9), %s1785_s13, 1  ;;  %s2326_s26 = sand.u32 (!%p122_p9), 1, %s1732_s10  }
  0x10   : > { %125 = sbr.rel (%p122_p9) target bundleno = 570 (0x23a), region = 24  ;;  %s1330_s27 = sshll.u32 (!%p122_p9), %s2326_s26, 7 }
  0x11   : > { %s2400_s28 = scalar_lea.vmem (!%p122_p9), [#allocation2], %s1330_s27  ;;  %s1407_s29 = sshll.u32 (!%p122_p9), %s1785_s13, 11 }
  0x12   : > { %s1218_s30 = sshll.u32 (!%p122_p9), %s2400_s28, 4  ;;  %s2730_s5 = scalar_lea.hbm (!%p122_p9), %s2843_s1, %s1407_s29  ;;  %s2732_s30 = int_to_ptr.vmem [resolvable:$true] %s1218_s30 }
  0x13   : > { %s1200_s6 = scalar_lea.sflag (!%p122_p9), [#allocation3], %s2326_s26  ;;  %s1650_s7 = scalar_lea.vmem (!%p122_p9), %s2732_s30, 2048 }
  0x14   : > { %p1651_p11 = scmp.ne.s32.totalorder (!%p122_p9), %s2732_s30, %s1650_s7  ;;  %s1744_s8 = smov (!%p122_p9), [#allocation2]  }
  0x15   : > { %s149_s21 = scalar_select %p148_p10, %s1785_s13, 1  ;;  %vm219_vm0 = vcmask 261120  }
  0x16   : > { %p1652_p12 = pnand %p1651_p11, %p1802_p5  ;;  %s1654_s14 = sshll.u32 %s1744_s8, 4  ;;  %s1655_s14 = int_to_ptr.vmem [resolvable:$false] %s1654_s14 }
  0x17   : > { %s1406_s22 = sshll.u32 %s149_s21, 8  ;;  %s1656_s16 = scalar_lea.vmem %s1655_s14, 4096 }
  0x18   : > { %s1817_s25 = scalar_lea.vmem %s2842_s0, %s1406_s22  ;;  %p1653_p13 = pneg %p1652_p12 }
  0x19   : > { %v1820_v0 = vld [vmem:[%s1817_s25 + $0xf8] sm:$0xff]  ;;  %v1823_v1 = vld [vmem:[%s1817_s25 + $0xf0] sm:$0xff]  ;;  %v1840_v8 = vld [vmem:[%s1817_s25 + $0xe8] sm:$0xff]  ;;  %p1657_p0 = scmp.lt.s32.totalorder %s2732_s30, %s1655_s14  ;;  %p1658_p1 = scmp.lt.s32.totalorder %s1656_s16, %s1650_s7 }
  0x1a   : > { %v1826_v2 = vld [vmem:[%s1817_s25 + $0x78] sm:$0xff]  ;;  %v218_v3 = vmul.f32 %v1820_v0, %v1820_v0  ;;  %v217_v4 = vmul.f32 %v1823_v1, %v1823_v1  ;;  %v1835_v6 = vld [vmem:[%s1817_s25 + $0x70] sm:$0xff]  ;;  %v1843_v9 = vld [vmem:[%s1817_s25 + $0x68] sm:$0xff]  ;;  %v216_v14 = vmul.f32 %v1840_v8, %v1840_v8 }
  0x1b   : > { %v202_v5 = vmul.f32 %v1826_v2, %v1826_v2  ;;  %v201_v7 = vmul.f32 %v1835_v6, %v1835_v6  ;;  %v200_v15 = vmul.f32 %v1843_v9, %v1843_v9  ;;  %v1854_v16 = vld [vmem:[%s1817_s25 + $0xe0] sm:$0xff]  ;;  %v1866_v22 = vld [vmem:[%s1817_s25 + $0xd8] sm:$0xff]  ;;  %v1878_v28 = vld [vmem:[%s1817_s25 + $0xd0] sm:$0xff]  ;;  %p1659_p2 = por %p1658_p1, %p1657_p0 }
  0x1c   : > { %v313_v10 = vsel %vm219_vm0, %v218_v3, 0.0  ;;  %v310_v11 = vsel %vm219_vm0, %v217_v4, 0.0  ;;  %v1857_v17 = vld [vmem:[%s1817_s25 + $0x60] sm:$0xff]  ;;  %v307_v18 = vsel %vm219_vm0, %v216_v14, 0.0  ;;  %v215_v20 = vmul.f32 %v1854_v16, %v1854_v16  ;;  %v1869_v23 = vld [vmem:[%s1817_s25 + $0x58] sm:$0xff]  ;;  %v1881_v29 = vld [vmem:[%s1817_s25 + $0x50] sm:$0xff] }
  0x1d   : > { %314 = vadd.xlane.f32.xlu0 %v313_v10  ;;  %311 = vadd.xlane.f32.xlu1 %v310_v11  ;;  %v265_v12 = vsel %vm219_vm0, %v202_v5, 0.0  ;;  %v262_v13 = vsel %vm219_vm0, %v201_v7, 0.0  ;;  %v259_v19 = vsel %vm219_vm0, %v200_v15, 0.0  ;;  %v199_v21 = vmul.f32 %v1857_v17, %v1857_v17  ;;  %v1890_v34 = vld [vmem:[%s1817_s25 + $0xc8] sm:$0xff]  ;;  %v1902_v40 = vld [vmem:[%s1817_s25 + $0xc0] sm:$0xff]  ;;  %v1914_v46 = vld [vmem:[%s1817_s25 + $0xb8] sm:$0xff]  ;;  %p1660_p3 = pnand %p1659_p2, %p1653_p13 }
  0x1e   : > { %v304_v24 = vsel %vm219_vm0, %v215_v20, 0.0  ;;  %v214_v26 = vmul.f32 %v1866_v22, %v1866_v22  ;;  %v198_v27 = vmul.f32 %v1869_v23, %v1869_v23  ;;  %v213_v32 = vmul.f32 %v1878_v28, %v1878_v28  ;;  %v1893_v35 = vld [vmem:[%s1817_s25 + $0x48] sm:$0xff]  ;;  %v1905_v41 = vld [vmem:[%s1817_s25 + $0x40] sm:$0xff]  ;;  %v1917_v47 = vld [vmem:[%s1817_s25 + $0x38] sm:$0xff] }
  0x1f   : > { %v256_v25 = vsel %vm219_vm0, %v199_v21, 0.0  ;;  %v197_v33 = vmul.f32 %v1881_v29, %v1881_v29  ;;  %v212_v38 = vmul.f32 %v1890_v34, %v1890_v34  ;;  %v196_v39 = vmul.f32 %v1893_v35, %v1893_v35  ;;  %v1926_v52 = vld [vmem:[%s1817_s25 + $0xb0] sm:$0xff]  ;;  %v1938_v58 = vld [vmem:[%s1817_s25 + $0xa8] sm:$0xff]  ;;  %v1950_v3 = vld [vmem:[%s1817_s25 + $0xa0] sm:$0xff] }
  0x20   : > { %v301_v30 = vsel %vm219_vm0, %v214_v26, 0.0  ;;  %v253_v31 = vsel %vm219_vm0, %v198_v27, 0.0  ;;  %v298_v36 = vsel %vm219_vm0, %v213_v32, 0.0  ;;  %v211_v44 = vmul.f32 %v1902_v40, %v1902_v40  ;;  %v1929_v53 = vld [vmem:[%s1817_s25 + $0x30] sm:$0xff]  ;;  %v1941_v59 = vld [vmem:[%s1817_s25 + $0x28] sm:$0xff]  ;;  %v1953_v4 = vld [vmem:[%s1817_s25 + $0x20] sm:$0xff] }
  0x21   : > { %266 = vadd.xlane.f32.xlu0 %v265_v12  ;;  %263 = vadd.xlane.f32.xlu1 %v262_v13  ;;  %v250_v37 = vsel %vm219_vm0, %v197_v33, 0.0  ;;  %v295_v42 = vsel %vm219_vm0, %v212_v38, 0.0  ;;  %v247_v43 = vsel %vm219_vm0, %v196_v39, 0.0  ;;  %v195_v45 = vmul.f32 %v1905_v41, %v1905_v41  ;;  %v1962_v12 = vld [vmem:[%s1817_s25 + $0x98] sm:$0xff]  ;;  %v1974_v20 = vld [vmem:[%s1817_s25 + $0x90] sm:$0xff]  ;;  %v1998_v38 = vld [vmem:[%s1817_s25 + $0x80] sm:$0xff] }
  0x22   : > { %v292_v48 = vsel %vm219_vm0, %v211_v44, 0.0  ;;  %v210_v50 = vmul.f32 %v1914_v46, %v1914_v46  ;;  %v194_v51 = vmul.f32 %v1917_v47, %v1917_v47  ;;  %v209_v56 = vmul.f32 %v1926_v52, %v1926_v52  ;;  %v1965_v13 = vld [vmem:[%s1817_s25 + $0x18] sm:$0xff]  ;;  %v1977_v21 = vld [vmem:[%s1817_s25 + $0x10] sm:$0xff]  ;;  %v2001_v39 = vld [vmem:[%s1817_s25] sm:$0xff] }
  0x23   : > { %v244_v49 = vsel %vm219_vm0, %v195_v45, 0.0  ;;  %v193_v57 = vmul.f32 %v1929_v53, %v1929_v53  ;;  %v208_v62 = vmul.f32 %v1938_v58, %v1938_v58  ;;  %v192_v63 = vmul.f32 %v1941_v59, %v1941_v59 }
  0x24   : > { %v289_v54 = vsel %vm219_vm0, %v210_v50, 0.0  ;;  %v241_v55 = vsel %vm219_vm0, %v194_v51, 0.0  ;;  %v286_v60 = vsel %vm219_vm0, %v209_v56, 0.0  ;;  %v207_v10 = vmul.f32 %v1950_v3, %v1950_v3 }
  0x25   : > { %308 = vadd.xlane.f32.xlu0 %v307_v18  ;;  %260 = vadd.xlane.f32.xlu1 %v259_v19  ;;  %v238_v61 = vsel %vm219_vm0, %v193_v57, 0.0  ;;  %v283_v5 = vsel %vm219_vm0, %v208_v62, 0.0  ;;  %v235_v7 = vsel %vm219_vm0, %v192_v63, 0.0  ;;  %v191_v11 = vmul.f32 %v1953_v4, %v1953_v4 }
  0x26   : > { %v280_v14 = vsel %vm219_vm0, %v207_v10, 0.0  ;;  %v206_v18 = vmul.f32 %v1962_v12, %v1962_v12  ;;  %v190_v19 = vmul.f32 %v1965_v13, %v1965_v13  ;;  %v205_v26 = vmul.f32 %v1974_v20, %v1974_v20 }
  0x27   : > { %v232_v15 = vsel %vm219_vm0, %v191_v11, 0.0  ;;  %v189_v27 = vmul.f32 %v1977_v21, %v1977_v21  ;;  %v203_v44 = vmul.f32 %v1998_v38, %v1998_v38  ;;  %v187_v45 = vmul.f32 %v2001_v39, %v2001_v39 }
  0x28   : > { %v274_v32 = vsel %vm219_vm0, %v205_v26, 0.0 }
  0x29   : > { %305 = vadd.xlane.f32.xlu0 %v304_v24  ;;  %257 = vadd.xlane.f32.xlu1 %v256_v25  ;;  %v277_v24 = vsel %vm219_vm0, %v206_v18, 0.0  ;;  %v229_v25 = vsel %vm219_vm0, %v190_v19, 0.0  ;;  %v226_v33 = vsel %vm219_vm0, %v189_v27, 0.0 }
  0x2d   : > { %302 = vadd.xlane.f32.xlu0 %v301_v30  ;;  %254 = vadd.xlane.f32.xlu1 %v253_v31  ;;  %v1986_v30 = vld [vmem:[%s1817_s25 + $0x88] sm:$0xff] }
  0x2e   : > { %v1989_v31 = vld [vmem:[%s1817_s25 + $0x8] sm:$0xff] }
  0x31   : > { %299 = vadd.xlane.f32.xlu0 %v298_v36  ;;  %251 = vadd.xlane.f32.xlu1 %v250_v37  ;;  %v204_v36 = vmul.f32 %v1986_v30, %v1986_v30  ;;  %v188_v37 = vmul.f32 %v1989_v31, %v1989_v31 }
  0x35   : > { %296 = vadd.xlane.f32.xlu0 %v295_v42  ;;  %248 = vadd.xlane.f32.xlu1 %v247_v43  ;;  %v271_v42 = vsel %vm219_vm0, %v204_v36, 0.0  ;;  %v223_v43 = vsel %vm219_vm0, %v188_v37, 0.0 }
  0x39   : > { %293 = vadd.xlane.f32.xlu0 %v292_v48  ;;  %245 = vadd.xlane.f32.xlu1 %v244_v49  ;;  %v268_v48 = vsel %vm219_vm0, %v203_v44, 0.0  ;;  %v220_v49 = vsel %vm219_vm0, %v187_v45, 0.0 }
  0x3d   : > { %290 = vadd.xlane.f32.xlu0 %v289_v54  ;;  %242 = vadd.xlane.f32.xlu1 %v241_v55 }
  0x41   : > { %287 = vadd.xlane.f32.xlu0 %v286_v60  ;;  %239 = vadd.xlane.f32.xlu1 %v238_v61 }
  0x45   : > { %284 = vadd.xlane.f32.xlu0 %v283_v5  ;;  %236 = vadd.xlane.f32.xlu1 %v235_v7 }
  0x49   : > { %281 = vadd.xlane.f32.xlu0 %v280_v14  ;;  %233 = vadd.xlane.f32.xlu1 %v232_v15 }
  0x4d   : > { %278 = vadd.xlane.f32.xlu0 %v277_v24  ;;  %230 = vadd.xlane.f32.xlu1 %v229_v25 }
  0x51   : > { %275 = vadd.xlane.f32.xlu0 %v274_v32  ;;  %227 = vadd.xlane.f32.xlu1 %v226_v33 }
  0x55   : > { %272 = vadd.xlane.f32.xlu0 %v271_v42  ;;  %224 = vadd.xlane.f32.xlu1 %v223_v43 }
  0x59   : > { %269 = vadd.xlane.f32.xlu0 %v268_v48  ;;  %221 = vadd.xlane.f32.xlu1 %v220_v49 }
  0xa6   : > { %v315_v50 = vpop.xlane.xlu0 %314  ;;  %v312_v51 = vpop.xlane.xlu1 %311 }
  0xa7   : > { %v347_v54 = vmax.f32 %v315_v50, 1e-24  ;;  %v346_v55 = vmax.f32 %v312_v51, 1e-24 }
  0xa9   : > { %1586 = vrsqrt.f32 %v347_v54 }
  0xaa   : > { %1588 = vrsqrt.f32 %v346_v55  ;;  %v267_v56 = vpop.xlane.xlu0 %266  ;;  %v264_v57 = vpop.xlane.xlu1 %263 }
  0xab   : > { %v331_v60 = vmax.f32 %v267_v56, 1e-24  ;;  %v330_v61 = vmax.f32 %v264_v57, 1e-24 }
  0xad   : > { %1590 = vrsqrt.f32 %v331_v60 }
  0xae   : > { %1592 = vrsqrt.f32 %v330_v61  ;;  %v309_v62 = vpop.xlane.xlu0 %308  ;;  %v261_v63 = vpop.xlane.xlu1 %260 }
  0xaf   : > { %v345_v5 = vmax.f32 %v309_v62, 1e-24  ;;  %v329_v7 = vmax.f32 %v261_v63, 1e-24 }
  0xb1   : > { %1594 = vrsqrt.f32 %v345_v5 }
  0xb2   : > { %1596 = vrsqrt.f32 %v329_v7  ;;  %v306_v10 = vpop.xlane.xlu0 %305  ;;  %v258_v11 = vpop.xlane.xlu1 %257 }
  0xb3   : > { %v344_v14 = vmax.f32 %v306_v10, 1e-24  ;;  %v328_v15 = vmax.f32 %v258_v11, 1e-24 }
  0xb5   : > { %1598 = vrsqrt.f32 %v344_v14 }
  0xb6   : > { %v1587_v18 = vpop.eup %1586  ;;  %1600 = vrsqrt.f32 %v328_v15  ;;  %v303_v19 = vpop.xlane.xlu0 %302 }
  0xb7   : > { %v255_v24 = vpop.xlane.xlu1 %254  ;;  %v1589_v25 = vpop.eup %1588  ;;  %v2012_v26 = vmul.f32 %v1587_v18, %v1820_v0  ;;  %v343_v27 = vmax.f32 %v303_v19, 1e-24 }
  0xb8   : > { %v327_v32 = vmax.f32 %v255_v24, 1e-24  ;;  %v2019_v37 = vmul.f32 %v1589_v25, %v1823_v1 }
  0xb9   : > { %1409 = vmatprep.subr.msk.mxu0 %vm219_vm0, %v2012_v26  ;;  %1505 = vmatprep.subr.msk.mxu1 %vm219_vm0, %v2012_v26  ;;  %1602 = vrsqrt.f32 %v343_v27 }
  0xba   : > { %v1591_v33 = vpop.eup %1590  ;;  %1604 = vrsqrt.f32 %v327_v32  ;;  %v300_v36 = vpop.xlane.xlu0 %299 }
  0xbb   : > { %v252_v42 = vpop.xlane.xlu1 %251  ;;  %v1593_v43 = vpop.eup %1592  ;;  %v2022_v0 = vmul.f32 %v1591_v33, %v1826_v2  ;;  %v342_v44 = vmax.f32 %v300_v36, 1e-24 }
  0xbc   : > { %v326_v45 = vmax.f32 %v252_v42, 1e-24  ;;  %v2029_v48 = vmul.f32 %v1593_v43, %v1835_v6 }
  0xbd   : > { %1410 = vmatpush3.xpose.msk.msra.mxu0 %vm219_vm0, %v2022_v0  ;;  %1521 = vmatpush3.xpose.msk.msra.mxu1 %vm219_vm0, %v2022_v0  ;;  %1606 = vrsqrt.f32 %v342_v44 }
  0xbe   : > { %v1595_v49 = vpop.eup %1594  ;;  %1411 = vmatprep.subr.msk.mxu0 %vm219_vm0, %v2019_v37  ;;  %1506 = vmatprep.subr.msk.mxu1 %vm219_vm0, %v2019_v37  ;;  %1608 = vrsqrt.f32 %v326_v45  ;;  %v297_v1 = vpop.xlane.xlu0 %296 }
  0xbf   : > { %v249_v2 = vpop.xlane.xlu1 %248  ;;  %v1597_v50 = vpop.eup %1596  ;;  %v341_v51 = vmax.f32 %v297_v1, 1e-24  ;;  %v2036_v55 = vmul.f32 %v1595_v49, %v1840_v8 }
  0xc0   : > { %v325_v54 = vmax.f32 %v249_v2, 1e-24  ;;  %v2043_v6 = vmul.f32 %v1597_v50, %v1843_v9 }
  0xc1   : > { %1610 = vrsqrt.f32 %v341_v51  ;;  %1412 = vmatpush3.xpose.msk.msra.mxu0 %vm219_vm0, %v2029_v48  ;;  %1522 = vmatpush3.xpose.msk.msra.mxu1 %vm219_vm0, %v2029_v48 }
  0xc2   : > { %v1599_v56 = vpop.eup %1598  ;;  %1612 = vrsqrt.f32 %v325_v54  ;;  %1413 = vmatprep.subr.msk.mxu0 %vm219_vm0, %v2036_v55  ;;  %1507 = vmatprep.subr.msk.mxu1 %vm219_vm0, %v2036_v55  ;;  %v294_v8 = vpop.xlane.xlu0 %293 }
  0xc3   : > { %v246_v57 = vpop.xlane.xlu1 %245  ;;  %v1601_v60 = vpop.eup %1600  ;;  %v340_v61 = vmax.f32 %v294_v8, 1e-24  ;;  %v2050_v63 = vmul.f32 %v1599_v56, %v1854_v16 }
  0xc4   : > { %v324_v62 = vmax.f32 %v246_v57, 1e-24  ;;  %v2057_v9 = vmul.f32 %v1601_v60, %v1857_v17 }
  0xc5   : > { %1614 = vrsqrt.f32 %v340_v61  ;;  %1414 = vmatpush3.xpose.msk.msra.mxu0 %vm219_vm0, %v2043_v6  ;;  %1523 = vmatpush3.xpose.msk.msra.mxu1 %vm219_vm0, %v2043_v6 }
  0xc6   : > { %v1603_v5 = vpop.eup %1602  ;;  %1616 = vrsqrt.f32 %v324_v62  ;;  %1415 = vmatprep.subr.msk.mxu0 %vm219_vm0, %v2050_v63  ;;  %1508 = vmatprep.subr.msk.mxu1 %vm219_vm0, %v2050_v63  ;;  %v291_v16 = vpop.xlane.xlu0 %290 }
  0xc7   : > { %v243_v7 = vpop.xlane.xlu1 %242  ;;  %v1605_v10 = vpop.eup %1604  ;;  %v339_v11 = vmax.f32 %v291_v16, 1e-24  ;;  %v2064_v15 = vmul.f32 %v1603_v5, %v1866_v22 }
  0xc8   : > { %v323_v14 = vmax.f32 %v243_v7, 1e-24  ;;  %v2071_v17 = vmul.f32 %v1605_v10, %v1869_v23 }
  0xc9   : > { %1618 = vrsqrt.f32 %v339_v11  ;;  %1416 = vmatpush3.xpose.msk.msra.mxu0 %vm219_vm0, %v2057_v9  ;;  %1524 = vmatpush3.xpose.msk.msra.mxu1 %vm219_vm0, %v2057_v9 }
  0xca   : > { %v1607_v18 = vpop.eup %1606  ;;  %1620 = vrsqrt.f32 %v323_v14  ;;  %1417 = vmatprep.subr.msk.mxu0 %vm219_vm0, %v2064_v15  ;;  %1509 = vmatprep.subr.msk.mxu1 %vm219_vm0, %v2064_v15  ;;  %v288_v22 = vpop.xlane.xlu0 %287 }
  0xcb   : > { %v240_v19 = vpop.xlane.xlu1 %239  ;;  %v1609_v24 = vpop.eup %1608  ;;  %v338_v25 = vmax.f32 %v288_v22, 1e-24  ;;  %v2078_v32 = vmul.f32 %v1607_v18, %v1878_v28 }
  0xcc   : > { %v322_v27 = vmax.f32 %v240_v19, 1e-24  ;;  %v2085_v23 = vmul.f32 %v1609_v24, %v1881_v29 }
  0xcd   : > { %1622 = vrsqrt.f32 %v338_v25  ;;  %1418 = vmatpush3.xpose.msk.msra.mxu0 %vm219_vm0, %v2071_v17  ;;  %1525 = vmatpush3.xpose.msk.msra.mxu1 %vm219_vm0, %v2071_v17 }
  0xce   : > { %v1611_v33 = vpop.eup %1610  ;;  %1624 = vrsqrt.f32 %v322_v27  ;;  %1419 = vmatprep.subr.msk.mxu0 %vm219_vm0, %v2078_v32  ;;  %1510 = vmatprep.subr.msk.mxu1 %vm219_vm0, %v2078_v32  ;;  %v285_v28 = vpop.xlane.xlu0 %284 }
  0xcf   : > { %v237_v36 = vpop.xlane.xlu1 %236  ;;  %v1613_v42 = vpop.eup %1612  ;;  %v337_v43 = vmax.f32 %v285_v28, 1e-24  ;;  %v2092_v45 = vmul.f32 %v1611_v33, %v1890_v34 }
  0xd0   : > { %v321_v44 = vmax.f32 %v237_v36, 1e-24  ;;  %v2099_v29 = vmul.f32 %v1613_v42, %v1893_v35 }
  0xd1   : > { %1626 = vrsqrt.f32 %v337_v43  ;;  %1420 = vmatpush3.xpose.msk.msra.mxu0 %vm219_vm0, %v2085_v23  ;;  %1526 = vmatpush3.xpose.msk.msra.mxu1 %vm219_vm0, %v2085_v23 }
  0xd2   : > { %v1615_v49 = vpop.eup %1614  ;;  %1628 = vrsqrt.f32 %v321_v44  ;;  %1421 = vmatprep.subr.msk.mxu0 %vm219_vm0, %v2092_v45  ;;  %1511 = vmatprep.subr.msk.mxu1 %vm219_vm0, %v2092_v45  ;;  %v282_v34 = vpop.xlane.xlu0 %281 }
  0xd3   : > { %v234_v1 = vpop.xlane.xlu1 %233  ;;  %v1617_v2 = vpop.eup %1616  ;;  %v336_v50 = vmax.f32 %v282_v34, 1e-24  ;;  %v2106_v54 = vmul.f32 %v1615_v49, %v1902_v40 }
  0xd4   : > { %v320_v51 = vmax.f32 %v234_v1, 1e-24  ;;  %v2113_v35 = vmul.f32 %v1617_v2, %v1905_v41 }
  0xd5   : > { %1630 = vrsqrt.f32 %v336_v50  ;;  %1422 = vmatpush3.xpose.msk.msra.mxu0 %vm219_vm0, %v2099_v29  ;;  %1527 = vmatpush3.xpose.msk.msra.mxu1 %vm219_vm0, %v2099_v29 }
  0xd6   : > { %v1619_v56 = vpop.eup %1618  ;;  %1632 = vrsqrt.f32 %v320_v51  ;;  %1423 = vmatprep.subr.msk.mxu0 %vm219_vm0, %v2106_v54  ;;  %1512 = vmatprep.subr.msk.mxu1 %vm219_vm0, %v2106_v54  ;;  %v279_v40 = vpop.xlane.xlu0 %278 }
  0xd7   : > { %v231_v8 = vpop.xlane.xlu1 %230  ;;  %v1621_v57 = vpop.eup %1620  ;;  %v335_v60 = vmax.f32 %v279_v40, 1e-24  ;;  %v2120_v62 = vmul.f32 %v1619_v56, %v1914_v46 }
  0xd8   : > { %v319_v61 = vmax.f32 %v231_v8, 1e-24  ;;  %v2127_v41 = vmul.f32 %v1621_v57, %v1917_v47 }
  0xd9   : > { %1634 = vrsqrt.f32 %v335_v60  ;;  %1424 = vmatpush3.xpose.msk.msra.mxu0 %vm219_vm0, %v2113_v35  ;;  %1528 = vmatpush3.xpose.msk.msra.mxu1 %vm219_vm0, %v2113_v35  ;;  %v1742_v60 = vmov 0  }
  0xda   : > { %v1623_v5 = vpop.eup %1622  ;;  %1636 = vrsqrt.f32 %v319_v61  ;;  %1425 = vmatprep.subr.msk.mxu0 %vm219_vm0, %v2120_v62  ;;  %1513 = vmatprep.subr.msk.mxu1 %vm219_vm0, %v2120_v62  ;;  %v276_v46 = vpop.xlane.xlu0 %275 }
  0xdb   : > { %v228_v16 = vpop.xlane.xlu1 %227  ;;  %v1625_v7 = vpop.eup %1624  ;;  %v334_v10 = vmax.f32 %v276_v46, 1e-24  ;;  %v2134_v14 = vmul.f32 %v1623_v5, %v1926_v52 }
  0xdc   : > { %v318_v11 = vmax.f32 %v228_v16, 1e-24  ;;  %v2141_v47 = vmul.f32 %v1625_v7, %v1929_v53 }
  0xdd   : > { %1638 = vrsqrt.f32 %v334_v10  ;;  %1426 = vmatpush3.xpose.msk.msra.mxu0 %vm219_vm0, %v2127_v41  ;;  %1529 = vmatpush3.xpose.msk.msra.mxu1 %vm219_vm0, %v2127_v41 }
  0xde   : > { %v1627_v18 = vpop.eup %1626  ;;  %1640 = vrsqrt.f32 %v318_v11  ;;  %1427 = vmatprep.subr.msk.mxu0 %vm219_vm0, %v2134_v14  ;;  %1514 = vmatprep.subr.msk.mxu1 %vm219_vm0, %v2134_v14  ;;  %v273_v52 = vpop.xlane.xlu0 %272 }
  0xdf   : > { %v225_v22 = vpop.xlane.xlu1 %224  ;;  %v1629_v19 = vpop.eup %1628  ;;  %v333_v24 = vmax.f32 %v273_v52, 1e-24  ;;  %v2148_v27 = vmul.f32 %v1627_v18, %v1938_v58 }
  0xe0   : > { %v317_v25 = vmax.f32 %v225_v22, 1e-24  ;;  %v2155_v53 = vmul.f32 %v1629_v19, %v1941_v59 }
  0xe1   : > { %1642 = vrsqrt.f32 %v333_v24  ;;  %1428 = vmatpush3.xpose.msk.msra.mxu0 %vm219_vm0, %v2141_v47  ;;  %1530 = vmatpush3.xpose.msk.msra.mxu1 %vm219_vm0, %v2141_v47 }
  0xe2   : > { %v1631_v33 = vpop.eup %1630  ;;  %1644 = vrsqrt.f32 %v317_v25  ;;  %1429 = vmatprep.subr.msk.mxu0 %vm219_vm0, %v2148_v27  ;;  %1515 = vmatprep.subr.msk.mxu1 %vm219_vm0, %v2148_v27  ;;  %v270_v58 = vpop.xlane.xlu0 %269 }
  0xe3   : > { %v222_v28 = vpop.xlane.xlu1 %221  ;;  %v1633_v36 = vpop.eup %1632  ;;  %v332_v42 = vmax.f32 %v270_v58, 1e-24  ;;  %v400_v44 = vmul.f32 %v1631_v33, %v1950_v3 }
  0xe4   : > { %v316_v43 = vmax.f32 %v222_v28, 1e-24  ;;  %v384_v59 = vmul.f32 %v1633_v36, %v1953_v4 }
  0xe5   : > { %1646 = vrsqrt.f32 %v332_v42  ;;  %1430 = vmatpush3.xpose.msk.msra.mxu0 %vm219_vm0, %v2155_v53  ;;  %1531 = vmatpush3.xpose.msk.msra.mxu1 %vm219_vm0, %v2155_v53 }
  0xe6   : > { %v1635_v49 = vpop.eup %1634  ;;  %1648 = vrsqrt.f32 %v316_v43  ;;  %1431 = vmatprep.subr.msk.mxu0 %vm219_vm0, %v400_v44  ;;  %1516 = vmatprep.subr.msk.mxu1 %vm219_vm0, %v400_v44  ;;  %v1743_v43 = vmov 1e-05  }
  0xe7   : > { %v1637_v34 = vpop.eup %1636  ;;  %v399_v1 = vmul.f32 %v1635_v49, %v1962_v12 }
  0xe8   : > { %v383_v3 = vmul.f32 %v1637_v34, %v1965_v13 }
  0xe9   : > { %1432 = vmatpush3.xpose.msk.msra.mxu0 %vm219_vm0, %v384_v59  ;;  %1532 = vmatpush3.xpose.msk.msra.mxu1 %vm219_vm0, %v384_v59 }
  0xea   : > { %v1639_v2 = vpop.eup %1638  ;;  %1433 = vmatprep.subr.msk.mxu0 %vm219_vm0, %v399_v1  ;;  %1517 = vmatprep.subr.msk.mxu1 %vm219_vm0, %v399_v1 }
  0xeb   : > { %v1641_v4 = vpop.eup %1640  ;;  %v398_v50 = vmul.f32 %v1639_v2, %v1974_v20 }
  0xec   : > { %v382_v12 = vmul.f32 %v1641_v4, %v1977_v21 }
  0xed   : > { %1434 = vmatpush3.xpose.msk.msra.mxu0 %vm219_vm0, %v383_v3  ;;  %1533 = vmatpush3.xpose.msk.msra.mxu1 %vm219_vm0, %v383_v3 }
  0xee   : > { %v1643_v51 = vpop.eup %1642  ;;  %1435 = vmatprep.subr.msk.mxu0 %vm219_vm0, %v398_v50  ;;  %1518 = vmatprep.subr.msk.mxu1 %vm219_vm0, %v398_v50 }
  0xef   : > { %v1645_v13 = vpop.eup %1644  ;;  %v397_v56 = vmul.f32 %v1643_v51, %v1986_v30 }
  0xf0   : > { %v381_v20 = vmul.f32 %v1645_v13, %v1989_v31 }
  0xf1   : > { %1436 = vmatpush3.xpose.msk.msra.mxu0 %vm219_vm0, %v382_v12  ;;  %1534 = vmatpush3.xpose.msk.msra.mxu1 %vm219_vm0, %v382_v12 }
  0xf2   : > { %v1647_v40 = vpop.eup %1646  ;;  %1437 = vmatprep.subr.msk.mxu0 %vm219_vm0, %v397_v56  ;;  %1519 = vmatprep.subr.msk.mxu1 %vm219_vm0, %v397_v56 }
  0xf3   : > { %v1649_v21 = vpop.eup %1648  ;;  %v396_v8 = vmul.f32 %v1647_v40, %v1998_v38 }
  0xf4   : > { %v380_v57 = vmul.f32 %v1649_v21, %v2001_v39 }
  0xf5   : > { %1438 = vmatpush3.xpose.msk.msra.mxu0 %vm219_vm0, %v381_v20  ;;  %1535 = vmatpush3.xpose.msk.msra.mxu1 %vm219_vm0, %v381_v20 }
  0xf6   : > { %1439 = vmatprep.subr.msk.mxu0 %vm219_vm0, %v396_v8  ;;  %1520 = vmatprep.subr.msk.mxu1 %vm219_vm0, %v396_v8 }
  0xf7   : > { %1473 = vmatprep.mubr.msk.f32.mxu1 %vm219_vm0, %v396_v8  ;;  %1441 = vmatprep.mubr.msk.f32.mxu0 %vm219_vm0, %v380_v57 }
  0xf9   : > { %1440 = vmatpush3.xpose.msk.msra.mxu0 %vm219_vm0, %v380_v57  ;;  %1536 = vmatpush3.xpose.msk.msra.mxu1 %vm219_vm0, %v380_v57 }
  0xfc   : > { %1442 = vmatmul.mubr.msk.f32.vlgmr.msra.gmra.mxu0 %vm219_vm0, %v380_v57  ;;  %1474 = vmatmul.mubr.msk.f32.vlgmr.msra.gmra.mxu1 %vm219_vm0, %v396_v8 }
  0xfd   : > { %1443 = vmatprep.mubr.msk.f32.mxu0 %vm219_vm0, %v381_v20  ;;  %1475 = vmatprep.mubr.msk.f32.mxu1 %vm219_vm0, %v397_v56 }
 0x100   : > { %1444 = vmatmul.mubr.msk.f32.gmra.mxu0 %vm219_vm0, %v381_v20  ;;  %1476 = vmatmul.mubr.msk.f32.gmra.mxu1 %vm219_vm0, %v397_v56 }
 0x101   : > { %1445 = vmatprep.mubr.msk.f32.mxu0 %vm219_vm0, %v382_v12  ;;  %1477 = vmatprep.mubr.msk.f32.mxu1 %vm219_vm0, %v398_v50 }
 0x104   : > { %1446 = vmatmul.mubr.msk.f32.gmra.mxu0 %vm219_vm0, %v382_v12  ;;  %1478 = vmatmul.mubr.msk.f32.gmra.mxu1 %vm219_vm0, %v398_v50 }
 0x105   : > { %1447 = vmatprep.mubr.msk.f32.mxu0 %vm219_vm0, %v383_v3  ;;  %1479 = vmatprep.mubr.msk.f32.mxu1 %vm219_vm0, %v399_v1 }
 0x108   : > { %1448 = vmatmul.mubr.msk.f32.gmra.mxu0 %vm219_vm0, %v383_v3  ;;  %1480 = vmatmul.mubr.msk.f32.gmra.mxu1 %vm219_vm0, %v399_v1 }
 0x109   : > { %1449 = vmatprep.mubr.msk.f32.mxu0 %vm219_vm0, %v384_v59  ;;  %1481 = vmatprep.mubr.msk.f32.mxu1 %vm219_vm0, %v400_v44 }
 0x10c   : > { %1450 = vmatmul.mubr.msk.f32.gmra.mxu0 %vm219_vm0, %v384_v59  ;;  %1482 = vmatmul.mubr.msk.f32.gmra.mxu1 %vm219_vm0, %v400_v44 }
 0x10d   : > { %1451 = vmatprep.mubr.msk.f32.mxu0 %vm219_vm0, %v2155_v53  ;;  %1483 = vmatprep.mubr.msk.f32.mxu1 %vm219_vm0, %v2148_v27 }
 0x110   : > { %1452 = vmatmul.mubr.msk.f32.gmra.mxu0 %vm219_vm0, %v2155_v53  ;;  %1484 = vmatmul.mubr.msk.f32.gmra.mxu1 %vm219_vm0, %v2148_v27 }
 0x111   : > { %1453 = vmatprep.mubr.msk.f32.mxu0 %vm219_vm0, %v2141_v47  ;;  %1485 = vmatprep.mubr.msk.f32.mxu1 %vm219_vm0, %v2134_v14 }
 0x114   : > { %1454 = vmatmul.mubr.msk.f32.gmra.mxu0 %vm219_vm0, %v2141_v47  ;;  %1486 = vmatmul.mubr.msk.f32.gmra.mxu1 %vm219_vm0, %v2134_v14 }
 0x115   : > { %1455 = vmatprep.mubr.msk.f32.mxu0 %vm219_vm0, %v2127_v41  ;;  %1487 = vmatprep.mubr.msk.f32.mxu1 %vm219_vm0, %v2120_v62 }
 0x118   : > { %1456 = vmatmul.mubr.msk.f32.gmra.mxu0 %vm219_vm0, %v2127_v41  ;;  %1488 = vmatmul.mubr.msk.f32.gmra.mxu1 %vm219_vm0, %v2120_v62 }
 0x119   : > { %1457 = vmatprep.mubr.msk.f32.mxu0 %vm219_vm0, %v2113_v35  ;;  %1489 = vmatprep.mubr.msk.f32.mxu1 %vm219_vm0, %v2106_v54 }
 0x11c   : > { %1458 = vmatmul.mubr.msk.f32.gmra.mxu0 %vm219_vm0, %v2113_v35  ;;  %1490 = vmatmul.mubr.msk.f32.gmra.mxu1 %vm219_vm0, %v2106_v54 }
 0x11d   : > { %1459 = vmatprep.mubr.msk.f32.mxu0 %vm219_vm0, %v2099_v29  ;;  %1491 = vmatprep.mubr.msk.f32.mxu1 %vm219_vm0, %v2092_v45 }
 0x120   : > { %1460 = vmatmul.mubr.msk.f32.gmra.mxu0 %vm219_vm0, %v2099_v29  ;;  %1492 = vmatmul.mubr.msk.f32.gmra.mxu1 %vm219_vm0, %v2092_v45 }
 0x121   : > { %1461 = vmatprep.mubr.msk.f32.mxu0 %vm219_vm0, %v2085_v23  ;;  %1493 = vmatprep.mubr.msk.f32.mxu1 %vm219_vm0, %v2078_v32 }
 0x124   : > { %1462 = vmatmul.mubr.msk.f32.gmra.mxu0 %vm219_vm0, %v2085_v23  ;;  %1494 = vmatmul.mubr.msk.f32.gmra.mxu1 %vm219_vm0, %v2078_v32 }
 0x125   : > { %1463 = vmatprep.mubr.msk.f32.mxu0 %vm219_vm0, %v2071_v17  ;;  %1495 = vmatprep.mubr.msk.f32.mxu1 %vm219_vm0, %v2064_v15 }
 0x128   : > { %1464 = vmatmul.mubr.msk.f32.gmra.mxu0 %vm219_vm0, %v2071_v17  ;;  %1496 = vmatmul.mubr.msk.f32.gmra.mxu1 %vm219_vm0, %v2064_v15 }
 0x129   : > { %1465 = vmatprep.mubr.msk.f32.mxu0 %vm219_vm0, %v2057_v9  ;;  %1497 = vmatprep.mubr.msk.f32.mxu1 %vm219_vm0, %v2050_v63 }
 0x12c   : > { %1466 = vmatmul.mubr.msk.f32.gmra.mxu0 %vm219_vm0, %v2057_v9  ;;  %1498 = vmatmul.mubr.msk.f32.gmra.mxu1 %vm219_vm0, %v2050_v63 }
 0x12d   : > { %1467 = vmatprep.mubr.msk.f32.mxu0 %vm219_vm0, %v2043_v6  ;;  %1499 = vmatprep.mubr.msk.f32.mxu1 %vm219_vm0, %v2036_v55 }
 0x130   : > { %1468 = vmatmul.mubr.msk.f32.gmra.mxu0 %vm219_vm0, %v2043_v6  ;;  %1500 = vmatmul.mubr.msk.f32.gmra.mxu1 %vm219_vm0, %v2036_v55 }
 0x131   : > { %1469 = vmatprep.mubr.msk.f32.mxu0 %vm219_vm0, %v2029_v48  ;;  %1501 = vmatprep.mubr.msk.f32.mxu1 %vm219_vm0, %v2019_v37 }
 0x134   : > { %1470 = vmatmul.mubr.msk.f32.gmra.mxu0 %vm219_vm0, %v2029_v48  ;;  %1502 = vmatmul.mubr.msk.f32.gmra.mxu1 %vm219_vm0, %v2019_v37 }
 0x135   : > { %1471 = vmatprep.mubr.msk.f32.mxu0 %vm219_vm0, %v2022_v0  ;;  %1503 = vmatprep.mubr.msk.f32.mxu1 %vm219_vm0, %v2012_v26 }
 0x138   : > { %1472 = vmatmul.mubr.msk.f32.gmra.mxu0 %vm219_vm0, %v2022_v0  ;;  %1504 = vmatmul.mubr.msk.f32.gmra.mxu1 %vm219_vm0, %v2012_v26 }
 0x1bc   : > { %v2303_v30 = vpop.f32.mrf.mxu0  ;;  %v2305_v31 = vpop.f32.mrf.mxu1 }
 0x1bd   : > { %vm765_vm3 = vcmp.gt.f32.partialorder %v2303_v30, 0.15  ;;  %vm2848_vm5 = vcmp.gt.f32.partialorder %v2305_v31, 0.15 }
 0x1be   : > { %v2307_v38 = vpop.f32.mrf.mxu0  ;;  %v2309_v39 = vpop.f32.mrf.mxu1  ;;  %v974_v3 = vsel %vm765_vm3, 1.0, %v1743_v43 }
 0x1bf   : > { %vm766_vm8 = vcmp.gt.f32.partialorder %v2307_v38, 0.15  ;;  %vm2847_vm10 = vcmp.gt.f32.partialorder %v2309_v39, 0.15 }
 0x1c0   : > { %v2311_v37 = vpop.f32.mrf.mxu0  ;;  %v2313_v48 = vpop.f32.mrf.mxu1  ;;  %v975_v51 = vsel %vm766_vm8, 1.0, %v1743_v43 }
 0x1c1   : > { %vm767_vm1 = vcmp.gt.f32.partialorder %v2311_v37, 0.15  ;;  %vm2846_vm2 = vcmp.gt.f32.partialorder %v2313_v48, 0.15 }
 0x1c2   : > { %v2315_v55 = vpop.f32.mrf.mxu0  ;;  %v2317_v6 = vpop.f32.mrf.mxu1  ;;  %vm2335_vm6 = vmpackc.low %vm767_vm1, %vm765_vm3  ;;  %v976_v44 = vsel %vm767_vm1, 1.0, %v1743_v43 }
 0x1c3   : > { %vm768_vm4 = vcmp.gt.f32.partialorder %v2315_v55, 0.15  ;;  %vm2845_vm7 = vcmp.gt.f32.partialorder %v2317_v6, 0.15  ;;  %vm2349_vm9 = vmpackc.low %vm2846_vm2, %vm2848_vm5  ;;  %v1102_v13 = vadd.f32 %v976_v44, %v974_v3 }
 0x1c4   : > { %v2321_v26 = vpop.f32.mrf.mxu0  ;;  %v2323_v0 = vpop.f32.mrf.mxu1  ;;  %vm2359_vm11 = vmpackc.low %vm768_vm4, %vm766_vm8  ;;  %v977_v1 = vsel %vm768_vm4, 1.0, %v1743_v43 }
 0x1c5   : > { %vm2371_vm12 = vmpackc.low %vm2845_vm7, %vm2847_vm10  ;;  %vm769_vm13 = vcmp.gt.f32.partialorder %v2321_v26, 0.15  ;;  %vm2853_vm7 = vcmp.gt.f32.partialorder %v2323_v0, 0.15  ;;  %v1139_v20 = vadd.f32 %v977_v1, %v975_v51 }
 0x1c6   : > { %v2340_v9 = vpop.f32.mrf.mxu0  ;;  %v2342_v15 = vpop.f32.mrf.mxu1  ;;  %v978_v2 = vsel %vm769_vm13, 1.0, %v1743_v43 }
 0x1c7   : > { %vm2889_vm3 = vcmp.gt.f32.partialorder %v2340_v9, 0.15  ;;  %v1103_v30 = vadd.f32 %v1102_v13, %v978_v2 }
 0x1c8   : > { %v2363_v23 = vpop.f32.mrf.mxu0  ;;  %v2365_v45 = vpop.f32.mrf.mxu1  ;;  %v979_v56 = vsel %vm2889_vm3, 1.0, %v1743_v43 }
 0x1c9   : > { %vm2849_vm14 = vcmp.gt.f32.partialorder %v2363_v23, 0.15  ;;  %vm2850_vm15 = vcmp.gt.f32.partialorder %v2365_v45, 0.15  ;;  %v1140_v37 = vadd.f32 %v1139_v20, %v979_v56 }
 0x1ca   : > { %vm830_vm0 = vmpackc.low %vm2849_vm14, %vm769_vm13  ;;  %v2382_v54 = vpop.f32.mrf.mxu0  ;;  %v2384_v35 = vpop.f32.mrf.mxu1  ;;  %vm2863_vm14 = vcmp.gt.f32.partialorder %v2340_v9, 0.15  ;;  %vm2890_vm13 = vcmp.gt.f32.partialorder %v2363_v23, 0.15 }
 0x1cb   : > { %vm831_vm2 = vmpackc.even %vm830_vm0, %vm2335_vm6  ;;  %vm2858_vm10 = vcmp.gt.f32.partialorder %v2382_v54, 0.15  ;;  %vm2851_vm6 = vcmp.gt.f32.partialorder %v2384_v35, 0.15  ;;  %v980_v40 = vsel %vm2890_vm13, 1.0, %v1743_v43 }
 0x1cc   : > { %v877_v61 = vsel %vm831_vm2, 16843009, %v1742_v60  ;;  %vm854_vm5 = vmpackc.low %vm2850_vm15, %vm2853_vm7  ;;  %v2395_v62 = vpop.f32.mrf.mxu0  ;;  %v2397_v41 = vpop.f32.mrf.mxu1  ;;  %vm2852_vm15 = vcmp.gt.f32.partialorder %v2342_v15, 0.15  ;;  %v1104_v17 = vadd.f32 %v1103_v30, %v980_v40 }
 0x1cd   : > { %893 = vst [vmem:[%s2400_s28] sm:$0xff] %v877_v61  ;;  %vm855_vm2 = vmpackc.even %vm854_vm5, %vm2349_vm9 }
 0x1ce   : > { %v885_v5 = vsel %vm855_vm2, 16843009, %v1742_v60  ;;  %vm833_vm0 = vmpackc.low %vm2858_vm10, %vm2863_vm14  ;;  %v2411_v46 = vpop.f32.mrf.mxu0  ;;  %v2413_v16 = vpop.f32.mrf.mxu1 }
 0x1cf   : > { %901 = vst [vmem:[%s2400_s28 + $0x40] sm:$0xff] %v885_v5  ;;  %vm834_vm5 = vmpackc.even %vm833_vm0, %vm2359_vm11 }
 0x1d0   : > { %v878_v7 = vsel %vm834_vm5, 16843009, %v1742_v60  ;;  %vm857_vm9 = vmpackc.low %vm2851_vm6, %vm2852_vm15  ;;  %v2424_v10 = vpop.f32.mrf.mxu0  ;;  %v2426_v11 = vpop.f32.mrf.mxu1  ;;  %vm2855_vm5 = vcmp.gt.f32.partialorder %v2395_v62, 0.15  ;;  %vm2860_vm15 = vcmp.gt.f32.partialorder %v2411_v46, 0.15 }
 0x1d1   : > { %894 = vst [vmem:[%s2400_s28 + $0x8] sm:$0xff] %v878_v7  ;;  %vm858_vm2 = vmpackc.even %vm857_vm9, %vm2371_vm12  ;;  %vm2854_vm11 = vcmp.gt.f32.partialorder %v2424_v10, 0.15  ;;  %vm2856_vm0 = vcmp.gt.f32.partialorder %v2426_v11, 0.15 }
 0x1d2   : > { %v886_v14 = vsel %vm858_vm2, 16843009, %v1742_v60  ;;  %v2432_v47 = vpop.f32.mrf.mxu0  ;;  %v2434_v18 = vpop.f32.mrf.mxu1  ;;  %vm2857_vm12 = vcmp.gt.f32.partialorder %v2397_v41, 0.15  ;;  %vm2450_vm9 = vmpackc.low %vm2854_vm11, %vm2855_vm5  ;;  %vm2862_vm11 = vcmp.gt.f32.partialorder %v2413_v16, 0.15 }
 0x1d3   : > { %902 = vst [vmem:[%s2400_s28 + $0x48] sm:$0xff] %v886_v14  ;;  %vm2859_vm6 = vcmp.gt.f32.partialorder %v2432_v47, 0.15  ;;  %vm2861_vm2 = vcmp.gt.f32.partialorder %v2434_v18, 0.15  ;;  %vm2464_vm7 = vmpackc.low %vm2856_vm0, %vm2857_vm12 }
 0x1d4   : > { %v2439_v52 = vpop.f32.mrf.mxu0  ;;  %v2441_v22 = vpop.f32.mrf.mxu1  ;;  %vm2473_vm5 = vmpackc.low %vm2859_vm6, %vm2860_vm15  ;;  %vm2895_vm13 = vcmp.gt.f32.partialorder %v2432_v47, 0.15 }
 0x1d5   : > { %vm2485_vm0 = vmpackc.low %vm2861_vm2, %vm2862_vm11  ;;  %vm777_vm12 = vcmp.gt.f32.partialorder %v2439_v52, 0.15  ;;  %vm2870_vm2 = vcmp.gt.f32.partialorder %v2441_v22, 0.15  ;;  %v985_v5 = vsel %vm2895_vm13, 1.0, %v1743_v43 }
 0x1d6   : > { %v2455_v24 = vpop.f32.mrf.mxu0  ;;  %v2457_v25 = vpop.f32.mrf.mxu1  ;;  %v986_v7 = vsel %vm777_vm12, 1.0, %v1743_v43 }
 0x1d8   : > { %v2477_v33 = vpop.f32.mrf.mxu0  ;;  %v2479_v58 = vpop.f32.mrf.mxu1 }
 0x1d9   : > { %vm2864_vm10 = vcmp.gt.f32.partialorder %v2477_v33, 0.15  ;;  %vm2866_vm6 = vcmp.gt.f32.partialorder %v2479_v58, 0.15 }
 0x1da   : > { %vm836_vm15 = vmpackc.low %vm2864_vm10, %vm777_vm12  ;;  %v2496_v36 = vpop.f32.mrf.mxu0  ;;  %v2498_v42 = vpop.f32.mrf.mxu1  ;;  %vm2900_vm12 = vcmp.gt.f32.partialorder %v2477_v33, 0.15 }
 0x1db   : > { %vm837_vm11 = vmpackc.even %vm836_vm15, %vm2450_vm9  ;;  %vm780_vm14 = vcmp.gt.f32.partialorder %v2496_v36, 0.15  ;;  %vm778_vm15 = vcmp.gt.f32.partialorder %v2455_v24, 0.15  ;;  %vm2891_vm9 = vcmp.gt.f32.partialorder %v2382_v54, 0.15 }
 0x1dc   : > { %v879_v59 = vsel %vm837_vm11, 16843009, %v1742_v60  ;;  %vm860_vm10 = vmpackc.low %vm2866_vm6, %vm2870_vm2  ;;  %v2512_v49 = vpop.f32.mrf.mxu0  ;;  %v2514_v34 = vpop.f32.mrf.mxu1  ;;  %vm2865_vm11 = vcmp.gt.f32.partialorder %v2498_v42, 0.15  ;;  %v981_v38 = vsel %vm2891_vm9, 1.0, %v1743_v43  ;;  %v987_v53 = vsel %vm778_vm15, 1.0, %v1743_v43 }
 0x1dd   : > { %895 = vst [vmem:[%s2400_s28 + $0x10] sm:$0xff] %v879_v59  ;;  %vm861_vm1 = vmpackc.even %vm860_vm10, %vm2464_vm7  ;;  %vm2867_vm7 = vcmp.gt.f32.partialorder %v2457_v25, 0.15  ;;  %v1141_v23 = vadd.f32 %v1140_v37, %v981_v38  ;;  %v988_v28 = vsel %vm2900_vm12, 1.0, %v1743_v43  ;;  %v989_v33 = vsel %vm780_vm14, 1.0, %v1743_v43 }
 0x1de   : > { %v887_v4 = vsel %vm861_vm1, 16843009, %v1742_v60  ;;  %vm839_vm4 = vmpackc.low %vm780_vm14, %vm778_vm15  ;;  %v2535_v50 = vpop.f32.mrf.mxu0  ;;  %v2537_v12 = vpop.f32.mrf.mxu1  ;;  %vm2892_vm1 = vcmp.gt.f32.partialorder %v2395_v62, 0.15 }
 0x1df   : > { %903 = vst [vmem:[%s2400_s28 + $0x50] sm:$0xff] %v887_v4  ;;  %vm840_vm10 = vmpackc.even %vm839_vm4, %vm2473_vm5  ;;  %v982_v55 = vsel %vm2892_vm1, 1.0, %v1743_v43  ;;  %vm2893_vm4 = vcmp.gt.f32.partialorder %v2411_v46, 0.15 }
 0x1e0   : > { %v880_v21 = vsel %vm840_vm10, 16843009, %v1742_v60  ;;  %vm863_vm8 = vmpackc.low %vm2865_vm11, %vm2867_vm7  ;;  %v628_v8 = vpop.f32.mrf.mxu0  ;;  %v724_v57 = vpop.f32.mrf.mxu1  ;;  %v983_v32 = vsel %vm2893_vm4, 1.0, %v1743_v43  ;;  %v1105_v62 = vadd.f32 %v1104_v17, %v982_v55  ;;  %vm2869_vm11 = vcmp.gt.f32.partialorder %v2537_v12, 0.15 }
 0x1e1   : > { %896 = vst [vmem:[%s2400_s28 + $0x18] sm:$0xff] %v880_v21  ;;  %vm864_vm5 = vmpackc.even %vm863_vm8, %vm2485_vm0  ;;  %vm783_vm3 = vcmp.gt.f32.partialorder %v628_v8, 0.15  ;;  %vm2894_vm0 = vcmp.gt.f32.partialorder %v2424_v10, 0.15  ;;  %v1142_v46 = vadd.f32 %v1141_v23, %v983_v32 }
 0x1e2   : > { %v888_v26 = vsel %vm864_vm5, 16843009, %v1742_v60  ;;  %v630_v63 = vpop.f32.mrf.mxu0  ;;  %v726_v9 = vpop.f32.mrf.mxu1  ;;  %v984_v29 = vsel %vm2894_vm0, 1.0, %v1743_v43  ;;  %vm815_vm10 = vcmp.gt.f32.partialorder %v724_v57, 0.15 }
 0x1e3   : > { %904 = vst [vmem:[%s2400_s28 + $0x58] sm:$0xff] %v888_v26  ;;  %vm781_vm8 = vcmp.gt.f32.partialorder %v2512_v49, 0.15  ;;  %vm784_vm9 = vcmp.gt.f32.partialorder %v630_v63, 0.15  ;;  %v1106_v19 = vadd.f32 %v1105_v62, %v984_v29  ;;  %v1143_v27 = vadd.f32 %v1142_v46, %v985_v5 }
 0x1e4   : > { %v634_v54 = vpop.f32.mrf.mxu0  ;;  %v730_v61 = vpop.f32.mrf.mxu1  ;;  %vm2868_vm5 = vcmp.gt.f32.partialorder %v2514_v34, 0.15  ;;  %vm2585_vm1 = vmpackc.low %vm783_vm3, %vm781_vm8  ;;  %vm816_vm4 = vcmp.gt.f32.partialorder %v726_v9, 0.15  ;;  %vm782_vm0 = vcmp.gt.f32.partialorder %v2535_v50, 0.15 }
 0x1e5   : > { %vm2593_vm13 = vmpackc.low %vm815_vm10, %vm2868_vm5  ;;  %v1107_v3 = vadd.f32 %v1106_v19, %v986_v7  ;;  %vm785_vm15 = vcmp.gt.f32.partialorder %v634_v54, 0.15  ;;  %v990_v2 = vsel %vm781_vm8, 1.0, %v1743_v43  ;;  %v1144_v13 = vadd.f32 %v1143_v27, %v987_v53 }
 0x1e6   : > { %v636_v14 = vpop.f32.mrf.mxu0  ;;  %v732_v47 = vpop.f32.mrf.mxu1  ;;  %vm2607_vm6 = vmpackc.low %vm784_vm9, %vm782_vm0  ;;  %v991_v36 = vsel %vm782_vm0, 1.0, %v1743_v43  ;;  %v992_v49 = vsel %vm783_vm3, 1.0, %v1743_v43  ;;  %v993_v50 = vsel %vm784_vm9, 1.0, %v1743_v43  ;;  %v994_v8 = vsel %vm785_vm15, 1.0, %v1743_v43 }
 0x1e7   : > { %vm2613_vm10 = vmpackc.low %vm816_vm4, %vm2869_vm11  ;;  %v1108_v56 = vadd.f32 %v1107_v3, %v988_v28  ;;  %vm817_vm4 = vcmp.gt.f32.partialorder %v730_v61, 0.15  ;;  %v1145_v57 = vadd.f32 %v1144_v13, %v989_v33  ;;  %vm786_vm8 = vcmp.gt.f32.partialorder %v636_v14, 0.15 }
 0x1e8   : > { %v640_v59 = vpop.f32.mrf.mxu0  ;;  %v736_v1 = vpop.f32.mrf.mxu1  ;;  %v995_v63 = vsel %vm786_vm8, 1.0, %v1743_v43 }
 0x1e9   : > { %vm787_vm12 = vcmp.gt.f32.partialorder %v640_v59, 0.15  ;;  %vm819_vm7 = vcmp.gt.f32.partialorder %v736_v1, 0.15  ;;  %v1109_v30 = vadd.f32 %v1108_v56, %v990_v2  ;;  %v1146_v26 = vadd.f32 %v1145_v57, %v991_v36 }
 0x1ea   : > { %vm842_vm5 = vmpackc.low %vm787_vm12, %vm785_vm15  ;;  %v642_v4 = vpop.f32.mrf.mxu0  ;;  %v738_v51 = vpop.f32.mrf.mxu1  ;;  %v996_v17 = vsel %vm787_vm12, 1.0, %v1743_v43 }
 0x1eb   : > { %vm843_vm11 = vmpackc.even %vm842_vm5, %vm2585_vm1  ;;  %vm788_vm2 = vcmp.gt.f32.partialorder %v642_v4, 0.15  ;;  %vm820_vm1 = vcmp.gt.f32.partialorder %v738_v51, 0.15  ;;  %v1110_v9 = vadd.f32 %v1109_v30, %v992_v49  ;;  %v1147_v54 = vadd.f32 %v1146_v26, %v993_v50 }
 0x1ec   : > { %v881_v20 = vsel %vm843_vm11, 16843009, %v1742_v60  ;;  %vm866_vm14 = vmpackc.low %vm819_vm7, %vm817_vm4  ;;  %v646_v40 = vpop.f32.mrf.mxu0  ;;  %v742_v21 = vpop.f32.mrf.mxu1  ;;  %vm818_vm7 = vcmp.gt.f32.partialorder %v732_v47, 0.15  ;;  %v997_v62 = vsel %vm788_vm2, 1.0, %v1743_v43 }
 0x1ed   : > { %897 = vst [vmem:[%s2400_s28 + $0x20] sm:$0xff] %v881_v20  ;;  %vm867_vm5 = vmpackc.even %vm866_vm14, %vm2593_vm13  ;;  %vm789_vm0 = vcmp.gt.f32.partialorder %v646_v40, 0.15  ;;  %v1111_v61 = vadd.f32 %v1110_v9, %v994_v8  ;;  %v1148_v14 = vadd.f32 %v1147_v54, %v995_v63  ;;  %vm821_vm4 = vcmp.gt.f32.partialorder %v742_v21, 0.15 }
 0x1ee   : > { %v889_v38 = vsel %vm867_vm5, 16843009, %v1742_v60  ;;  %vm845_vm11 = vmpackc.low %vm788_vm2, %vm786_vm8  ;;  %v648_v37 = vpop.f32.mrf.mxu0  ;;  %v744_v55 = vpop.f32.mrf.mxu1  ;;  %v998_v46 = vsel %vm789_vm0, 1.0, %v1743_v43  ;;  %v909_v9 = vlaneseq }
 0x1ef   : > { %905 = vst [vmem:[%s2400_s28 + $0x60] sm:$0xff] %v889_v38  ;;  %vm846_vm3 = vmpackc.even %vm845_vm11, %vm2607_vm6  ;;  %vm790_vm13 = vcmp.gt.f32.partialorder %v648_v37, 0.15  ;;  %v1112_v47 = vadd.f32 %v1111_v61, %v996_v17  ;;  %v1149_v28 = vadd.f32 %v1148_v14, %v997_v62  ;;  %vm822_vm11 = vcmp.gt.f32.partialorder %v744_v55, 0.15 }
 0x1f0   : > { %v882_v32 = vsel %vm846_vm3, 16843009, %v1742_v60  ;;  %vm869_vm9 = vmpackc.low %vm820_vm1, %vm818_vm7  ;;  %v652_v23 = vpop.f32.mrf.mxu0  ;;  %v748_v29 = vpop.f32.mrf.mxu1  ;;  %v999_v19 = vsel %vm790_vm13, 1.0, %v1743_v43 }
 0x1f1   : > { %898 = vst [vmem:[%s2400_s28 + $0x28] sm:$0xff] %v882_v32  ;;  %vm870_vm6 = vmpackc.even %vm869_vm9, %vm2613_vm10  ;;  %vm791_vm15 = vcmp.gt.f32.partialorder %v652_v23, 0.15  ;;  %vm823_vm10 = vcmp.gt.f32.partialorder %v748_v29, 0.15  ;;  %v1113_v44 = vadd.f32 %v1112_v47, %v998_v46  ;;  %v1150_v2 = vadd.f32 %v1149_v28, %v999_v19 }
 0x1f2   : > { %v890_v5 = vsel %vm870_vm6, 16843009, %v1742_v60  ;;  %v654_v7 = vpop.f32.mrf.mxu0  ;;  %v750_v10 = vpop.f32.mrf.mxu1  ;;  %v1000_v52 = vsel %vm791_vm15, 1.0, %v1743_v43  ;;  %vm2667_vm14 = vmpackc.low %vm791_vm15, %vm789_vm0 }
 0x1f3   : > { %906 = vst [vmem:[%s2400_s28 + $0x68] sm:$0xff] %v890_v5  ;;  %vm792_vm12 = vcmp.gt.f32.partialorder %v654_v7, 0.15  ;;  %vm824_vm8 = vcmp.gt.f32.partialorder %v750_v10, 0.15  ;;  %v1114_v4 = vadd.f32 %v1113_v44, %v1000_v52  ;;  %vm2676_vm5 = vmpackc.low %vm823_vm10, %vm821_vm4 }
 0x1f4   : > { %v658_v27 = vpop.f32.mrf.mxu0  ;;  %v754_v53 = vpop.f32.mrf.mxu1  ;;  %v1001_v1 = vsel %vm792_vm12, 1.0, %v1743_v43  ;;  %vm2682_vm7 = vmpackc.low %vm792_vm12, %vm790_vm13  ;;  %vm2913_vm10 = vcmp.gt.f32.partialorder %v2305_v31, 0.15 }
 0x1f5   : > { %vm793_vm2 = vcmp.gt.f32.partialorder %v658_v27, 0.15  ;;  %v1151_v20 = vadd.f32 %v1150_v2, %v1001_v1  ;;  %vm2688_vm3 = vmpackc.low %vm824_vm8, %vm822_vm11  ;;  %vm825_vm13 = vcmp.gt.f32.partialorder %v754_v53, 0.15  ;;  %v1006_v37 = vsel %vm2913_vm10, 1.0, %v1743_v43 }
 0x1f6   : > { %v1002_v3 = vsel %vm793_vm2, 1.0, %v1743_v43  ;;  %v660_v24 = vpop.f32.mrf.mxu0  ;;  %v756_v33 = vpop.f32.mrf.mxu1  ;;  %vm2914_vm8 = vcmp.gt.f32.partialorder %v2309_v39, 0.15  ;;  %vm2915_vm11 = vcmp.gt.f32.partialorder %v2313_v48, 0.15 }
 0x1f7   : > { %vm794_vm1 = vcmp.gt.f32.partialorder %v660_v24, 0.15  ;;  %v1115_v21 = vadd.f32 %v1114_v4, %v1002_v3  ;;  %v1007_v31 = vsel %vm2914_vm8, 1.0, %v1743_v43  ;;  %v1008_v32 = vsel %vm2915_vm11, 1.0, %v1743_v43 }
 0x1f8   : > { %v1003_v56 = vsel %vm794_vm1, 1.0, %v1743_v43  ;;  %v664_v36 = vpop.f32.mrf.mxu0  ;;  %v760_v49 = vpop.f32.mrf.mxu1  ;;  %vm2920_vm10 = vcmp.gt.f32.partialorder %v2384_v35, 0.15 }
 0x1f9   : > { %vm795_vm0 = vcmp.gt.f32.partialorder %v664_v36, 0.15  ;;  %vm827_vm9 = vcmp.gt.f32.partialorder %v760_v49, 0.15  ;;  %v1152_v8 = vadd.f32 %v1151_v20, %v1003_v56  ;;  %v1013_v47 = vsel %vm2920_vm10, 1.0, %v1743_v43 }
 0x1fa   : > { %vm848_vm6 = vmpackc.low %vm795_vm0, %vm793_vm2  ;;  %v1004_v57 = vsel %vm795_vm0, 1.0, %v1743_v43  ;;  %v666_v30 = vpop.f32.mrf.mxu0  ;;  %v762_v50 = vpop.f32.mrf.mxu1 }
 0x1fb   : > { %vm849_vm15 = vmpackc.even %vm848_vm6, %vm2667_vm14  ;;  %v1116_v38 = vadd.f32 %v1115_v21, %v1004_v57  ;;  %vm796_vm12 = vcmp.gt.f32.partialorder %v666_v30, 0.15  ;;  %vm828_vm14 = vcmp.gt.f32.partialorder %v762_v50, 0.15  ;;  %vm2916_vm6 = vcmp.gt.f32.partialorder %v2317_v6, 0.15 }
 0x1fc   : > { %v883_v55 = vsel %vm849_vm15, 16843009, %v1742_v60  ;;  %vm872_vm2 = vmpackc.low %vm827_vm9, %vm825_vm13  ;;  %v1005_v26 = vsel %vm796_vm12, 1.0, %v1743_v43  ;;  %vm826_vm9 = vcmp.gt.f32.partialorder %v756_v33, 0.15  ;;  %v1009_v39 = vsel %vm2916_vm6, 1.0, %v1743_v43 }
 0x1fd   : > { %899 = vst [vmem:[%s2400_s28 + $0x30] sm:$0xff] %v883_v55  ;;  %v1117_v63 = vadd.f32 %v1116_v38, %v1006_v37  ;;  %vm873_vm4 = vmpackc.even %vm872_vm2, %vm2676_vm5  ;;  %v1153_v17 = vadd.f32 %v1152_v8, %v1005_v26  ;;  %vm2917_vm13 = vcmp.gt.f32.partialorder %v2323_v0, 0.15  ;;  %v2735_v6 = vshrl.u32 %v909_v9, 7 }
 0x1fe   : > { %v891_v23 = vsel %vm873_vm4, 16843009, %v1742_v60  ;;  %vm851_vm0 = vmpackc.low %vm796_vm12, %vm794_vm1  ;;  %v1010_v48 = vsel %vm2917_vm13, 1.0, %v1743_v43  ;;  %vm2918_vm15 = vcmp.gt.f32.partialorder %v2342_v15, 0.15 }
 0x1ff   : > { %v1118_v29 = vadd.f32 %v1117_v63, %v1008_v32  ;;  %907 = vst [vmem:[%s2400_s28 + $0x70] sm:$0xff] %v891_v23  ;;  %vm852_vm5 = vmpackc.even %vm851_vm0, %vm2682_vm7  ;;  %v1154_v54 = vadd.f32 %v1153_v17, %v1007_v31  ;;  %v1011_v5 = vsel %vm2918_vm15, 1.0, %v1743_v43  ;;  %vm2919_vm12 = vcmp.gt.f32.partialorder %v2365_v45, 0.15 }
 0x200   : > { %v884_v61 = vsel %vm852_vm5, 16843009, %v1742_v60  ;;  %vm875_vm1 = vmpackc.low %vm828_vm14, %vm826_vm9  ;;  %v1012_v46 = vsel %vm2919_vm12, 1.0, %v1743_v43 }
 0x201   : > { %v1119_v0 = vadd.f32 %v1118_v29, %v1010_v48  ;;  %900 = vst [vmem:[%s2400_s28 + $0x38] sm:$0xff] %v884_v61  ;;  %v1155_v62 = vadd.f32 %v1154_v54, %v1009_v39  ;;  %vm876_vm7 = vmpackc.even %vm875_vm1, %vm2688_vm3  ;;  %vm2921_vm3 = vcmp.gt.f32.partialorder %v2397_v41, 0.15 }
 0x202   : > { %v892_v7 = vsel %vm876_vm7, 16843009, %v1742_v60  ;;  %v1014_v19 = vsel %vm2921_vm3, 1.0, %v1743_v43 }
 0x203   : > { %v1120_v10 = vadd.f32 %v1119_v0, %v1012_v46  ;;  %v1156_v14 = vadd.f32 %v1155_v62, %v1011_v5  ;;  %908 = vst [vmem:[%s2400_s28 + $0x78] sm:$0xff] %v892_v7 }
 0x204   : > { %1663 = shalt.err (!%p1660_p3)
}
 0x205   : > { %s1664_s17 = scalar_lea.hbm %s2730_s5, 2048  ;;  %s1668_s23 = scalar_lea.hbm %s2843_s1, 4096 }
 0x206   : > { %p1665_p4 = scmp.ne.s32.totalorder %s2730_s5, %s1664_s17  ;;  %p1669_p9 = scmp.lt.s32.totalorder %s2730_s5, %s2843_s1 }
 0x207   : > { %p1670_p10 = scmp.lt.s32.totalorder %s1668_s23, %s1664_s17 }
 0x208   : > { %p1666_p7 = pnand %p1665_p4, %p1802_p5 }
 0x209   : > { %p1671_p11 = por %p1670_p10, %p1669_p9 }
 0x20a   : > { %p1667_p8 = pneg %p1666_p7 }
 0x20c   : > { %p1672_p12 = pnand %p1671_p11, %p1667_p8 }
 0x20e   : > { %1675 = shalt.err (!%p1672_p12)
}
 0x20f   : > { %s1745_s27 = smov 256   ;;  %s1746_s28 = smov 16   ;;  %v934_v15 = vadd.s32 192, %v2735_v6  ;;  %v1121_v45 = vadd.f32 %v1120_v10, %v1014_v19  ;;  %v1157_v35 = vadd.f32 %v1156_v14, %v1013_v47  ;;  %vm2922_vm2 = vcmp.gt.f32.partialorder %v2413_v16, 0.15 }
 0x210   : > { %1537 = dma.vmem_to_hbm [thread:$0]  (%p1802_p5), %s2732_s30, 2048, %s2730_s5, %s1200_s6, %s1745_s27, %s1745_s27, %s1746_s28   ;;  %v1015_v60 = vsel %vm2922_vm2, 1.0, %v1743_v43  ;;  %vm2923_vm4 = vcmp.gt.f32.partialorder %v2426_v11, 0.15  ;;  %vm2924_vm14 = vcmp.gt.f32.partialorder %v2434_v18, 0.15 }
 0x211   : > { %v1016_v41 = vsel %vm2923_vm4, 1.0, %v1743_v43  ;;  %v1158_v27 = vadd.f32 %v1157_v35, %v1015_v60  ;;  %v1017_v53 = vsel %vm2924_vm14, 1.0, %v1743_v43  ;;  %vm2925_vm8 = vcmp.gt.f32.partialorder %v2441_v22, 0.15  ;;  %s1331_s29 = sshll.u32 %s2326_s26, 1  ;;  %s1408_s30 = sshll.u32 %s1785_s13, 5 }
 0x212   : > { %v1122_v52 = vadd.f32 %v1121_v45, %v1016_v41  ;;  %v1018_v28 = vsel %vm2925_vm8, 1.0, %v1743_v43  ;;  %vm966_vm11 = vcmp.lt.s32.totalorder %v934_v15, 196  ;;  %vm2926_vm0 = vcmp.gt.f32.partialorder %v2514_v34, 0.15  ;;  %s147_s3 = scalar_lea.vmem [#allocation4], %s1331_s29  ;;  %s1233_s7 = scalar_lea.hbm %s2844_s2, %s1408_s30 }
 0x213   : > { %v1022_v16 = vsel %vm2926_vm0, 1.0, %v1743_v43  ;;  %v1159_v59 = vadd.f32 %v1158_v27, %v1017_v53  ;;  %vm2927_vm9 = vcmp.gt.f32.partialorder %v2457_v25, 0.15  ;;  %vm2928_vm5 = vcmp.gt.f32.partialorder %v2479_v58, 0.15  ;;  %s1235_s4 = sshll.u32 %s147_s3, 4  ;;  %s1236_s4 = int_to_ptr.vmem [resolvable:$true] %s1235_s4 }
 0x214   : > { %v1123_v44 = vadd.f32 %v1122_v52, %v1018_v28  ;;  %v1019_v11 = vsel %vm2927_vm9, 1.0, %v1743_v43  ;;  %v1020_v18 = vsel %vm2928_vm5, 1.0, %v1743_v43  ;;  %vm2929_vm6 = vcmp.gt.f32.partialorder %v2537_v12, 0.15  ;;  %s1205_s8 = scalar_lea.sflag [#allocation5], %s2326_s26  ;;  %s1676_s14 = scalar_lea.vmem %s1236_s4, 32 }
 0x215   : > { %v1023_v22 = vsel %vm2929_vm6, 1.0, %v1743_v43  ;;  %v1160_v3 = vadd.f32 %v1159_v59, %v1019_v11  ;;  %vm2930_vm13 = vcmp.gt.f32.partialorder %v2498_v42, 0.15  ;;  %v1086_v24 = vsel %vm966_vm11, %v1022_v16, 0.0  ;;  %p1677_p13 = scmp.ne.s32.totalorder %s1236_s4, %s1676_s14  ;;  %s1748_s16 = smov [#allocation4]  }
 0x216   : > { %v1124_v1 = vadd.f32 %v1123_v44, %v1020_v18  ;;  %v1021_v34 = vsel %vm2930_vm13, 1.0, %v1743_v43  ;;  %v1087_v25 = vsel %vm966_vm11, %v1023_v22, 0.0  ;;  %v1747_v56 = vmov 1966171168   ;;  %s1680_s13 = sshll.u32 %s1748_s16, 4  ;;  %s1681_s13 = int_to_ptr.vmem [resolvable:$false] %s1680_s13 }
 0x217   : > { %v1161_v33 = vadd.f32 %v1160_v3, %v1021_v34  ;;  %v1180_v36 = vunpack.c.l.s4 %v1747_v56  ;;  %vm1196_vm1 = vcmp.lt.s32.totalorder %v909_v9, 256  ;;  %p1678_p0 = pnand %p1677_p13, %p1802_p5  ;;  %s1682_s17 = scalar_lea.vmem %s1681_s13, 64 }
 0x218   : > { %v1125_v2 = vadd.f32 %v1124_v1, %v1086_v24  ;;  %p1683_p2 = scmp.lt.s32.totalorder %s1236_s4, %s1681_s13  ;;  %p1684_p3 = scmp.lt.s32.totalorder %s1682_s17, %s1676_s14 }
 0x219   : > { %v1162_v4 = vadd.f32 %v1161_v33, %v1087_v25  ;;  %v1181_v21 = vunpack.c.0.s8 %v1180_v36  ;;  %p1679_p1 = pneg %p1678_p0 }
 0x21a   : > { %v1133_v51 = vrot.slane %v1125_v2, 4  ;;  %p1685_p4 = por %p1684_p3, %p1683_p2 }
 0x21b   : > { %v1170_v58 = vrot.slane %v1162_v4, 4  ;;  %v1184_v30 = vsub.s32 %v1181_v21, %v2735_v6 }
 0x21c   : > { %v1134_v13 = vadd.f32 %v1133_v51, %v1125_v2  ;;  %p1686_p7 = pnand %p1685_p4, %p1679_p1 }
 0x21d   : > { %v1171_v49 = vadd.f32 %v1170_v58, %v1162_v4 }
 0x21e   : > { %v1135_v12 = vrot.slane %v1134_v13, 2 }
 0x21f   : > { %v1172_v40 = vrot.slane %v1171_v49, 2 }
 0x220   : > { %v1136_v20 = vadd.f32 %v1135_v12, %v1134_v13 }
 0x221   : > { %v1173_v42 = vadd.f32 %v1172_v40, %v1171_v49 }
 0x222   : > { %v1137_v57 = vrot.slane %v1136_v20, 1 }
 0x223   : > { %v1174_v43 = vrot.slane %v1173_v42, 1 }
 0x224   : > { %v1138_v50 = vadd.f32 %v1137_v57, %v1136_v20 }
 0x225   : > { %v1175_v8 = vadd.f32 %v1174_v43, %v1173_v42 }
 0x227   : > { %v1178_v38 = vcombine.low %v1138_v50, %v1175_v8 }
 0x229   : > { %v1185_v37 = vrot.slane %v1178_v38, %v1184_v30 }
 0x22b   : > { %v1192_v55 = vrot.slane %v1185_v37, %v1184_v30 }
 0x22d   : > { %1198 = vst.msk [vmem:[%s147_s3] sm:$0x3] %vm1196_vm1, %v1192_v55 }
 0x22e   : > { %1689 = shalt.err (!%p1686_p7)
}
 0x22f   : > { %s1690_s21 = scalar_lea.hbm %s1233_s7, 32  ;;  %s1694_s23 = scalar_lea.hbm %s2844_s2, 64 }
 0x230   : > { %p1691_p8 = scmp.ne.s32.totalorder %s1233_s7, %s1690_s21  ;;  %p1695_p11 = scmp.lt.s32.totalorder %s1233_s7, %s2844_s2 }
 0x231   : > { %p1696_p12 = scmp.lt.s32.totalorder %s1694_s23, %s1690_s21 }
 0x232   : > { %p1692_p9 = pnand %p1691_p8, %p1802_p5 }
 0x233   : > { %p1697_p13 = por %p1696_p12, %p1695_p11 }
 0x234   : > { %p1693_p10 = pneg %p1692_p9 }
 0x236   : > { %p1698_p0 = pnand %p1697_p13, %p1693_p10 }
 0x238   : > { %1701 = shalt.err (!%p1698_p0)
}
 0x239   : > { %1538 = dma.vmem_to_hbm [thread:$0]  (%p1802_p5), %s1236_s4, 32, %s1233_s7, %s1205_s8  }
 0x23a PF: > { %p1548_p1 = scmp.ge.s32.totalorder %s1740_s12, 2  ;;  %s1247_s27 = sand.u32 1, %s1728_s9  }
 0x23b   : > { %s1248_s28 = scalar_lea.sflag [#allocation3], %s1247_s27 }
 0x23c   : > { %p1542_p2 = pnand %p1548_p1, %p1806_p6 }
 0x23e   : > { %p1543_p3 = pneg %p1542_p2 }
 0x240   : > { %1719 = dma.done.wait (%p1543_p3), %s1248_s28, 2048  }
 0x241   : > { %1721 = vsyncadd (%p1543_p3), %s1248_s28, 4294965248  ;;  %s1257_s29 = scalar_lea.sflag [#allocation5], %s1247_s27 }
 0x242   : > { %1723 = dma.done.wait (%p1543_p3), %s1257_s29, 32  }
 0x243   : > { %1725 = vsyncadd (%p1543_p3), %s1257_s29, 4294967264  ;;  %p16_p5 = scmp.ge.s32.totalorder %s1789_s15, 4   ;;  %s2931_s9 = smov %s1732_s10 }
 0x244   : > { %s2932_s10 = smov %s1736_s11  ;;  %s2933_s11 = smov %s1800_s18 }
 0x245   : > { %s2934_s12 = smov %s1789_s15  ;;  %18 = sbr.rel (!%p16_p5) target bundleno = 5 (0x5), region = 76 }
 0x24a   :  { %1262 = vsyncpa [#allocation3], 1 }
 0x24b   :  { %1264 = vsyncpa [#allocation3 + $0x1], 1 }
 0x24c   :  { %1265 = vsyncpa [#allocation5], 1 }
 0x24d   :  { %1267 = vsyncpa [#allocation5 + $0x1], 1 }

</bundles_post_ra>
